<compile_context>
chip_gen: v5e
topology: v5e:2x2
jax: 0.10.0
libtpu: 0.0.40
codegen_flags: <defaults>
</compile_context>

<pallas_src>
import functools

import jax
import jax.numpy as jnp
from jax.experimental import pallas as pl
from jax.experimental.pallas import tpu as pltpu

LANES = 128        # lane-dense channel padding
NUM_CLASSES = 10
FC_HIDDEN_PAD = 512


# ------------------------------------------------------------------ kernels --

def _conv_relu_pool_kernel(p_ref, w_ref, b_ref, o_ref, a_scr,
                           *, ho_pad, wo_pad, pho, pwo):
    """Fused conv-as-matmul + bias + ReLU + 3x3/stride-2 max-pool, one image.

    p_ref : (1, ho_pad*wo_pad, K) bf16 im2col patches, rows ordered
            (y, x_parity, x_half) -> stride-2 W pooling == contiguous slices.
    w_ref : (K, 128) bf16  (real Cout columns, zero-padded to the lane width)
    b_ref : (1, 128) f32
    o_ref : (1, pho, pwo, 128) bf16 pooled activation
    a_scr : (ho_pad, wo_pad, 128) f32 scratch for the conv+ReLU output
    """
    cp = w_ref.shape[1]
    acc = jnp.dot(p_ref[0], w_ref[...], preferred_element_type=jnp.float32)
    acc = jnp.maximum(acc + b_ref[...], 0.0)                  # f32 epilogue
    # wo_pad is a multiple of 8 and cp == 128, so this reshape is layout
    # preserving (pure metadata).
    a_scr[...] = acc.reshape(ho_pad, wo_pad, cp)

    # ---- max-pool along W.  Columns are stored as [even x | odd x] blocks,
    # so out_w(y, px) = max(a[y,2px], a[y,2px+1], a[y,2px+2]) is three
    # contiguous sublane slices of the scratch (tree max, depth 2).
    wh = wo_pad // 2
    ev0 = a_scr[:, 0:pwo, :]
    od0 = a_scr[:, wh:wh + pwo, :]
    ev1 = a_scr[:, 1:pwo + 1, :]
    wmax = jnp.maximum(jnp.maximum(ev0, od0), ev1)            # (ho_pad, pwo, cp)

    # ---- max-pool along H (leading, untiled dim): even/odd row split via a
    # metadata-only leading-dim reshape.
    hh = ho_pad // 2
    rows = wmax.reshape(hh, 2, pwo, cp)
    evr = rows[:, 0]
    odr = rows[:, 1]
    out = jnp.maximum(jnp.maximum(evr[:pho], odr[:pho]), evr[1:pho + 1])
    o_ref[0] = out.astype(o_ref.dtype)


def conv_relu_pool(patches, w, b, *, ho_pad, wo_pad, pho, pwo):
    n, hw, k = patches.shape
    cp = w.shape[1]
    kern = functools.partial(_conv_relu_pool_kernel,
                             ho_pad=ho_pad, wo_pad=wo_pad, pho=pho, pwo=pwo)
    flops = 2 * n * hw * k * cp
    bytes_accessed = (patches.size * patches.dtype.itemsize
                      + w.size * w.dtype.itemsize
                      + b.size * b.dtype.itemsize
                      + n * pho * pwo * cp * 2)
    return pl.pallas_call(
        kern,
        out_shape=jax.ShapeDtypeStruct((n, pho, pwo, cp), jnp.bfloat16),
        grid=(n,),
        in_specs=[
            pl.BlockSpec((1, hw, k), lambda i: (i, 0, 0)),
            pl.BlockSpec((k, cp), lambda i: (0, 0)),    # weights stay resident
            pl.BlockSpec((1, cp), lambda i: (0, 0)),
        ],
        out_specs=pl.BlockSpec((1, pho, pwo, cp), lambda i: (i, 0, 0, 0)),
        scratch_shapes=[pltpu.VMEM((ho_pad, wo_pad, cp), jnp.float32)],
        compiler_params=pltpu.CompilerParams(
            dimension_semantics=("parallel",)),
        cost_estimate=pl.CostEstimate(
            flops=flops, transcendentals=0, bytes_accessed=bytes_accessed),
    )(patches, w, b)


def _fc_head_kernel(x_ref, w1_ref, w2_ref, o_ref):
    h = jnp.maximum(
        jnp.dot(x_ref[...], w1_ref[...], preferred_element_type=jnp.float32),
        0.0)
    logits = jnp.dot(h.astype(w2_ref.dtype), w2_ref[...],
                     preferred_element_type=jnp.float32)
    # Mask the zero-padded class lanes before the (lane-dense) log_softmax.
    lane = jax.lax.broadcasted_iota(jnp.int32, logits.shape, 1)
    logits = jnp.where(lane < NUM_CLASSES, logits, -1e30)
    m = jnp.max(logits, axis=1, keepdims=True)
    s = logits - m
    lse = jnp.log(jnp.sum(jnp.exp(s), axis=1, keepdims=True))
    o_ref[...] = s - lse


def fc_head(x, w1, w2):
    n, k1 = x.shape
    h = w1.shape[1]
    cp = w2.shape[1]
    return pl.pallas_call(
        _fc_head_kernel,
        out_shape=jax.ShapeDtypeStruct((n, cp), jnp.float32),
        grid=(1,),
        in_specs=[
            pl.BlockSpec((n, k1), lambda i: (0, 0)),
            pl.BlockSpec((k1, h), lambda i: (0, 0)),
            pl.BlockSpec((h, cp), lambda i: (0, 0)),
        ],
        out_specs=pl.BlockSpec((n, cp), lambda i: (0, 0)),
        compiler_params=pltpu.CompilerParams(
            dimension_semantics=("arbitrary",)),
    )(x, w1, w2)


# --------------------------------------------------------------------- glue --

def _im2col(x_nhwc, k):
    n, hh, ww, c = x_nhwc.shape
    ho, wo = hh - k + 1, ww - k + 1
    patches = jnp.stack(
        [x_nhwc[:, ky:ky + ho, kx:kx + wo, :] for ky in range(k) for kx in range(k)],
        axis=3)                                    # (n, ho, wo, k*k, c)
    return patches.reshape(n, ho, wo, k * k * c)   # features ordered (ky, kx, cin)


def _pool_friendly_rows(p, ho_pad, wo_pad):
    """(n, ho, wo, K) -> (n, ho_pad*wo_pad, K); rows ordered (y, x_par, x_half).

    Spatial dims are zero-padded up to (ho_pad, wo_pad) (padded positions are
    never read by the fused pool), so the kernel-side reshapes are 8-sublane
    aligned and the stride-2 pooling needs only contiguous slices.
    """
    n, ho, wo, kk = p.shape
    p = jnp.pad(p, ((0, 0), (0, ho_pad - ho), (0, wo_pad - wo), (0, 0)))
    even = p[:, :, 0::2, :]
    odd = p[:, :, 1::2, :]
    pr = jnp.concatenate([even, odd], axis=2)      # (n, ho_pad, wo_pad, K)
    return pr.reshape(n, ho_pad * wo_pad, kk)


def mnist_net_forward(x_nchw, params):
    n = x_nchw.shape[0]
    x = jnp.transpose(x_nchw, (0, 2, 3, 1)).astype(jnp.float32)   # NHWC (n,28,28,1)

    # conv1 (1->20, 5x5) + ReLU + maxpool(3, s=2), fused
    p1 = _pool_friendly_rows(_im2col(x, 5), 24, 24).astype(jnp.bfloat16)
    a1 = conv_relu_pool(p1, params["conv1_w"], params["conv1_b"],
                        ho_pad=24, wo_pad=24, pho=11, pwo=11)     # (n,11,11,128)
    a1 = a1[..., :20]                                             # real channels

    # conv2 (20->50, 5x5) + ReLU + maxpool(3, s=2), fused
    p2 = _pool_friendly_rows(_im2col(a1, 5), 8, 8)                # bf16 already
    a2 = conv_relu_pool(p2, params["conv2_w"], params["conv2_b"],
                        ho_pad=8, wo_pad=8, pho=3, pwo=3)         # (n,3,3,128)
    a2 = a2[..., :50]

    # NHWC flatten; fc1's columns were pre-permuted to this order, so no
    # runtime NCHW transpose is needed.
    flat = a2.reshape(n, 3 * 3 * 50)

    # fc1 + ReLU + fc2 + log_softmax (lane-dense head), then drop pad classes.
    return fc_head(flat, params["fc1_w"], params["fc2_w"])[:, :NUM_CLASSES]


# ---------------------------------------------------------------- parameters --

def init_raw_params(key):
    """PyTorch-layout parameters (same init scheme as nn.Conv2d / nn.Linear)."""
    ks = jax.random.split(key, 6)

    def u(k, shape, fan_in):
        bound = 1.0 / (fan_in ** 0.5)
        return jax.random.uniform(k, shape, jnp.float32, -bound, bound)

    return {
        "conv1_w": u(ks[0], (20, 1, 5, 5), 1 * 25),
        "conv1_b": u(ks[1], (20,), 1 * 25),
        "conv2_w": u(ks[2], (50, 20, 5, 5), 20 * 25),
        "conv2_b": u(ks[3], (50,), 20 * 25),
        "fc1_w": u(ks[4], (500, 450), 450),   # (out, in); in ordered (c, y, x)
        "fc2_w": u(ks[5], (10, 500), 500),
    }


def prepare_params(raw):
    """One-time weight massaging: conv weights to (K, Cout) matmul layout
    zero-padded to 128 lanes (bf16), fc1 input permuted to the NHWC flatten
    order, fc dims padded to lane-friendly sizes."""
    def pad_cols(m, cols):
        return jnp.pad(m, ((0, 0), (0, cols - m.shape[1])))

    w1 = jnp.transpose(raw["conv1_w"], (2, 3, 1, 0)).reshape(25, 20)
    w2 = jnp.transpose(raw["conv2_w"], (2, 3, 1, 0)).reshape(500, 50)
    b1 = jnp.pad(raw["conv1_b"], (0, LANES - 20)).reshape(1, LANES)
    b2 = jnp.pad(raw["conv2_b"], (0, LANES - 50)).reshape(1, LANES)

    # fc1: torch flattens (c, y, x); the kernel feeds (y, x, c).  Fold the
    # permutation into the weight matrix offline.
    fc1 = raw["fc1_w"].T.reshape(50, 3, 3, 500)          # (c, y, x, out)
    fc1 = jnp.transpose(fc1, (1, 2, 0, 3)).reshape(450, 500)
    fc1 = pad_cols(fc1, FC_HIDDEN_PAD)
    fc2 = jnp.pad(raw["fc2_w"].T,
                  ((0, FC_HIDDEN_PAD - 500), (0, LANES - NUM_CLASSES)))

    return {
        "conv1_w": pad_cols(w1, LANES).astype(jnp.bfloat16),
        "conv1_b": b1.astype(jnp.float32),
        "conv2_w": pad_cols(w2, LANES).astype(jnp.bfloat16),
        "conv2_b": b2.astype(jnp.float32),
        "fc1_w": fc1.astype(jnp.bfloat16),
        "fc2_w": fc2.astype(jnp.bfloat16),
    }


if __name__ == "__main__":
    key = jax.random.PRNGKey(0)
    pkey, xkey = jax.random.split(key)
    params = prepare_params(init_raw_params(pkey))
    x = jax.random.normal(xkey, (2, 1, 28, 28), jnp.float32)  # MNIST-shaped input

    out = jax.jit(mnist_net_forward)(x, params)
    out = jax.block_until_ready(out)

    assert out.shape == (2, 10), out.shape
    # log_softmax invariant: rows of exp() sum to 1
    row_sums = jnp.sum(jnp.exp(out), axis=1)
    assert bool(jnp.allclose(row_sums, 1.0, atol=1e-3)), row_sums
    print("KERNEL_OK")
</pallas_src>

<mosaic_0001>
module attributes {stable_mosaic.version = 11 : i64} {
  func.func @_conv_relu_pool_kernel(%arg0: i32, %arg1: memref<1x576x25xbf16, #tpu.memory_space<vmem>>, %arg2: memref<25x128xbf16, #tpu.memory_space<vmem>>, %arg3: memref<1x128xf32, #tpu.memory_space<vmem>>, %arg4: memref<1x11x11x128xbf16, #tpu.memory_space<vmem>>, %arg5: memref<24x24x128xf32, #tpu.memory_space<vmem>>) attributes {dimension_semantics = [#tpu.dimension_semantics<parallel>], iteration_bounds = array<i64: 2>, scalar_prefetch = 0 : i64, scratch_operands = 1 : i64, tpu.core_type = #tpu.core_type<tc>, window_params = [{transform_indices = @transform_0, window_bounds = array<i64: 1, 576, 25>}, {pipeline_mode = #tpu.pipeline_mode<synchronous>, transform_indices = @transform_1, window_bounds = array<i64: 25, 128>}, {pipeline_mode = #tpu.pipeline_mode<synchronous>, transform_indices = @transform_2, window_bounds = array<i64: 1, 128>}, {transform_indices = @transform_3, window_bounds = array<i64: 1, 11, 11, 128>}]} {
    %c0 = arith.constant 0 : index
    %c0_0 = arith.constant 0 : index
    %c0_1 = arith.constant 0 : index
    %0 = vector.load %arg1[%c0, %c0_0, %c0_1] : memref<1x576x25xbf16, #tpu.memory_space<vmem>>, vector<1x576x25xbf16>
    %1 = vector.shape_cast %0 : vector<1x576x25xbf16> to vector<576x25xbf16>
    %c0_2 = arith.constant 0 : index
    %c0_3 = arith.constant 0 : index
    %2 = vector.load %arg2[%c0_2, %c0_3] : memref<25x128xbf16, #tpu.memory_space<vmem>>, vector<25x128xbf16>
    %cst = arith.constant dense<0.000000e+00> : vector<576x128xf32>
    %3 = tpu.matmul %1, %2, %cst {dimension_numbers = #tpu.dot_dimension_numbers<[1], [0], [0], [1], [0, 0, 1, 1], [], []>} : vector<576x25xbf16>, vector<25x128xbf16>, vector<576x128xf32> -> vector<576x128xf32>
    %c0_4 = arith.constant 0 : index
    %c0_5 = arith.constant 0 : index
    %4 = vector.load %arg3[%c0_4, %c0_5] : memref<1x128xf32, #tpu.memory_space<vmem>>, vector<1x128xf32>
    %5 = vector.broadcast %4 : vector<1x128xf32> to vector<576x128xf32>
    %6 = arith.addf %3, %5 : vector<576x128xf32>
    %cst_6 = arith.constant 0.000000e+00 : f32
    %7 = vector.broadcast %cst_6 : f32 to vector<576x128xf32>
    %8 = arith.maximumf %6, %7 : vector<576x128xf32>
    %9 = vector.shape_cast %8 : vector<576x128xf32> to vector<24x24x128xf32>
    %c0_7 = arith.constant 0 : index
    %c0_8 = arith.constant 0 : index
    %c0_9 = arith.constant 0 : index
    %10 = vector.load %arg5[%c0_7, %c0_8, %c0_9] : memref<24x24x128xf32, #tpu.memory_space<vmem>>, vector<24x24x128xf32>
    tpu.vector_store %arg5[%c0_7, %c0_8, %c0_9], %9 {strides = array<i32>} : memref<24x24x128xf32, #tpu.memory_space<vmem>>, vector<24x24x128xf32>,
    %c0_10 = arith.constant 0 : index
    %c0_11 = arith.constant 0 : index
    %c0_12 = arith.constant 0 : index
    %11 = vector.load %arg5[%c0_10, %c0_11, %c0_12] : memref<24x24x128xf32, #tpu.memory_space<vmem>>, vector<24x11x128xf32>
    %c0_13 = arith.constant 0 : index
    %c12 = arith.constant 12 : index
    %c0_14 = arith.constant 0 : index
    %12 = vector.load %arg5[%c0_13, %c12, %c0_14] : memref<24x24x128xf32, #tpu.memory_space<vmem>>, vector<24x11x128xf32>
    %c0_15 = arith.constant 0 : index
    %c1 = arith.constant 1 : index
    %c0_16 = arith.constant 0 : index
    %13 = vector.load %arg5[%c0_15, %c1, %c0_16] : memref<24x24x128xf32, #tpu.memory_space<vmem>>, vector<24x11x128xf32>
    %14 = arith.maximumf %11, %12 : vector<24x11x128xf32>
    %15 = arith.maximumf %14, %13 : vector<24x11x128xf32>
    %16 = vector.shape_cast %15 : vector<24x11x128xf32> to vector<12x2x11x128xf32>
    %17 = vector.extract_strided_slice %16 {offsets = [0, 0, 0, 0], sizes = [12, 1, 11, 128], strides = [1, 1, 1, 1]} : vector<12x2x11x128xf32> to vector<12x1x11x128xf32>
    %18 = vector.shape_cast %17 : vector<12x1x11x128xf32> to vector<12x11x128xf32>
    %19 = vector.extract_strided_slice %16 {offsets = [0, 1, 0, 0], sizes = [12, 1, 11, 128], strides = [1, 1, 1, 1]} : vector<12x2x11x128xf32> to vector<12x1x11x128xf32>
    %20 = vector.shape_cast %19 : vector<12x1x11x128xf32> to vector<12x11x128xf32>
    %21 = vector.extract_strided_slice %18 {offsets = [0, 0, 0], sizes = [11, 11, 128], strides = [1, 1, 1]} : vector<12x11x128xf32> to vector<11x11x128xf32>
    %22 = vector.extract_strided_slice %20 {offsets = [0, 0, 0], sizes = [11, 11, 128], strides = [1, 1, 1]} : vector<12x11x128xf32> to vector<11x11x128xf32>
    %23 = arith.maximumf %21, %22 : vector<11x11x128xf32>
    %24 = vector.extract_strided_slice %18 {offsets = [1, 0, 0], sizes = [11, 11, 128], strides = [1, 1, 1]} : vector<12x11x128xf32> to vector<11x11x128xf32>
    %25 = arith.maximumf %23, %24 : vector<11x11x128xf32>
    %26 = arith.truncf %25 : vector<11x11x128xf32> to vector<11x11x128xbf16>
    %c0_17 = arith.constant 0 : index
    %c0_18 = arith.constant 0 : index
    %c0_19 = arith.constant 0 : index
    %c0_20 = arith.constant 0 : index
    %27 = vector.load %arg4[%c0_17, %c0_18, %c0_19, %c0_20] : memref<1x11x11x128xbf16, #tpu.memory_space<vmem>>, vector<1x11x11x128xbf16>
    %28 = vector.shape_cast %27 : vector<1x11x11x128xbf16> to vector<11x11x128xbf16>
    %29 = vector.shape_cast %26 : vector<11x11x128xbf16> to vector<1x11x11x128xbf16>
    tpu.vector_store %arg4[%c0_17, %c0_18, %c0_19, %c0_20], %29 {strides = array<i32>} : memref<1x11x11x128xbf16, #tpu.memory_space<vmem>>, vector<1x11x11x128xbf16>,
    return
  }
  func.func @transform_0(%arg0: i32) -> (i32, i32, i32) {
    %c0_i32 = arith.constant 0 : i32
    %c0_i32_0 = arith.constant 0 : i32
    %c0_i32_1 = arith.constant 0 : i32
    return %arg0, %c0_i32, %c0_i32_0 : i32, i32, i32
  }
  func.func @transform_1(%arg0: i32) -> (i32, i32) {
    %c0_i32 = arith.constant 0 : i32
    %c0_i32_0 = arith.constant 0 : i32
    %c0_i32_1 = arith.constant 0 : i32
    return %c0_i32, %c0_i32_0 : i32, i32
  }
  func.func @transform_2(%arg0: i32) -> (i32, i32) {
    %c0_i32 = arith.constant 0 : i32
    %c0_i32_0 = arith.constant 0 : i32
    %c0_i32_1 = arith.constant 0 : i32
    return %c0_i32, %c0_i32_0 : i32, i32
  }
  func.func @transform_3(%arg0: i32) -> (i32, i32, i32, i32) {
    %c0_i32 = arith.constant 0 : i32
    %c0_i32_0 = arith.constant 0 : i32
    %c0_i32_1 = arith.constant 0 : i32
    %c0_i32_2 = arith.constant 0 : i32
    return %arg0, %c0_i32, %c0_i32_0, %c0_i32_1 : i32, i32, i32, i32
  }
}

module attributes {stable_mosaic.version = 11 : i64} {
  func.func @_conv_relu_pool_kernel(%arg0: i32, %arg1: memref<1x64x500xbf16, #tpu.memory_space<vmem>>, %arg2: memref<500x128xbf16, #tpu.memory_space<vmem>>, %arg3: memref<1x128xf32, #tpu.memory_space<vmem>>, %arg4: memref<1x3x3x128xbf16, #tpu.memory_space<vmem>>, %arg5: memref<8x8x128xf32, #tpu.memory_space<vmem>>) attributes {dimension_semantics = [#tpu.dimension_semantics<parallel>], iteration_bounds = array<i64: 2>, scalar_prefetch = 0 : i64, scratch_operands = 1 : i64, tpu.core_type = #tpu.core_type<tc>, window_params = [{transform_indices = @transform_0, window_bounds = array<i64: 1, 64, 500>}, {pipeline_mode = #tpu.pipeline_mode<synchronous>, transform_indices = @transform_1, window_bounds = array<i64: 500, 128>}, {pipeline_mode = #tpu.pipeline_mode<synchronous>, transform_indices = @transform_2, window_bounds = array<i64: 1, 128>}, {transform_indices = @transform_3, window_bounds = array<i64: 1, 3, 3, 128>}]} {
    %c0 = arith.constant 0 : index
    %c0_0 = arith.constant 0 : index
    %c0_1 = arith.constant 0 : index
    %0 = vector.load %arg1[%c0, %c0_0, %c0_1] : memref<1x64x500xbf16, #tpu.memory_space<vmem>>, vector<1x64x500xbf16>
    %1 = vector.shape_cast %0 : vector<1x64x500xbf16> to vector<64x500xbf16>
    %c0_2 = arith.constant 0 : index
    %c0_3 = arith.constant 0 : index
    %2 = vector.load %arg2[%c0_2, %c0_3] : memref<500x128xbf16, #tpu.memory_space<vmem>>, vector<500x128xbf16>
    %cst = arith.constant dense<0.000000e+00> : vector<64x128xf32>
    %3 = tpu.matmul %1, %2, %cst {dimension_numbers = #tpu.dot_dimension_numbers<[1], [0], [0], [1], [0, 0, 1, 1], [], []>} : vector<64x500xbf16>, vector<500x128xbf16>, vector<64x128xf32> -> vector<64x128xf32>
    %c0_4 = arith.constant 0 : index
    %c0_5 = arith.constant 0 : index
    %4 = vector.load %arg3[%c0_4, %c0_5] : memref<1x128xf32, #tpu.memory_space<vmem>>, vector<1x128xf32>
    %5 = vector.broadcast %4 : vector<1x128xf32> to vector<64x128xf32>
    %6 = arith.addf %3, %5 : vector<64x128xf32>
    %cst_6 = arith.constant 0.000000e+00 : f32
    %7 = vector.broadcast %cst_6 : f32 to vector<64x128xf32>
    %8 = arith.maximumf %6, %7 : vector<64x128xf32>
    %9 = vector.shape_cast %8 : vector<64x128xf32> to vector<8x8x128xf32>
    %c0_7 = arith.constant 0 : index
    %c0_8 = arith.constant 0 : index
    %c0_9 = arith.constant 0 : index
    %10 = vector.load %arg5[%c0_7, %c0_8, %c0_9] : memref<8x8x128xf32, #tpu.memory_space<vmem>>, vector<8x8x128xf32>
    tpu.vector_store %arg5[%c0_7, %c0_8, %c0_9], %9 {strides = array<i32>} : memref<8x8x128xf32, #tpu.memory_space<vmem>>, vector<8x8x128xf32>,
    %c0_10 = arith.constant 0 : index
    %c0_11 = arith.constant 0 : index
    %c0_12 = arith.constant 0 : index
    %11 = vector.load %arg5[%c0_10, %c0_11, %c0_12] : memref<8x8x128xf32, #tpu.memory_space<vmem>>, vector<8x3x128xf32>
    %c0_13 = arith.constant 0 : index
    %c4 = arith.constant 4 : index
    %c0_14 = arith.constant 0 : index
    %12 = vector.load %arg5[%c0_13, %c4, %c0_14] : memref<8x8x128xf32, #tpu.memory_space<vmem>>, vector<8x3x128xf32>
    %c0_15 = arith.constant 0 : index
    %c1 = arith.constant 1 : index
    %c0_16 = arith.constant 0 : index
    %13 = vector.load %arg5[%c0_15, %c1, %c0_16] : memref<8x8x128xf32, #tpu.memory_space<vmem>>, vector<8x3x128xf32>
    %14 = arith.maximumf %11, %12 : vector<8x3x128xf32>
    %15 = arith.maximumf %14, %13 : vector<8x3x128xf32>
    %16 = vector.shape_cast %15 : vector<8x3x128xf32> to vector<4x2x3x128xf32>
    %17 = vector.extract_strided_slice %16 {offsets = [0, 0, 0, 0], sizes = [4, 1, 3, 128], strides = [1, 1, 1, 1]} : vector<4x2x3x128xf32> to vector<4x1x3x128xf32>
    %18 = vector.shape_cast %17 : vector<4x1x3x128xf32> to vector<4x3x128xf32>
    %19 = vector.extract_strided_slice %16 {offsets = [0, 1, 0, 0], sizes = [4, 1, 3, 128], strides = [1, 1, 1, 1]} : vector<4x2x3x128xf32> to vector<4x1x3x128xf32>
    %20 = vector.shape_cast %19 : vector<4x1x3x128xf32> to vector<4x3x128xf32>
    %21 = vector.extract_strided_slice %18 {offsets = [0, 0, 0], sizes = [3, 3, 128], strides = [1, 1, 1]} : vector<4x3x128xf32> to vector<3x3x128xf32>
    %22 = vector.extract_strided_slice %20 {offsets = [0, 0, 0], sizes = [3, 3, 128], strides = [1, 1, 1]} : vector<4x3x128xf32> to vector<3x3x128xf32>
    %23 = arith.maximumf %21, %22 : vector<3x3x128xf32>
    %24 = vector.extract_strided_slice %18 {offsets = [1, 0, 0], sizes = [3, 3, 128], strides = [1, 1, 1]} : vector<4x3x128xf32> to vector<3x3x128xf32>
    %25 = arith.maximumf %23, %24 : vector<3x3x128xf32>
    %26 = arith.truncf %25 : vector<3x3x128xf32> to vector<3x3x128xbf16>
    %c0_17 = arith.constant 0 : index
    %c0_18 = arith.constant 0 : index
    %c0_19 = arith.constant 0 : index
    %c0_20 = arith.constant 0 : index
    %27 = vector.load %arg4[%c0_17, %c0_18, %c0_19, %c0_20] : memref<1x3x3x128xbf16, #tpu.memory_space<vmem>>, vector<1x3x3x128xbf16>
    %28 = vector.shape_cast %27 : vector<1x3x3x128xbf16> to vector<3x3x128xbf16>
    %29 = vector.shape_cast %26 : vector<3x3x128xbf16> to vector<1x3x3x128xbf16>
    tpu.vector_store %arg4[%c0_17, %c0_18, %c0_19, %c0_20], %29 {strides = array<i32>} : memref<1x3x3x128xbf16, #tpu.memory_space<vmem>>, vector<1x3x3x128xbf16>,
    return
  }
  func.func @transform_0(%arg0: i32) -> (i32, i32, i32) {
    %c0_i32 = arith.constant 0 : i32
    %c0_i32_0 = arith.constant 0 : i32
    %c0_i32_1 = arith.constant 0 : i32
    return %arg0, %c0_i32, %c0_i32_0 : i32, i32, i32
  }
  func.func @transform_1(%arg0: i32) -> (i32, i32) {
    %c0_i32 = arith.constant 0 : i32
    %c0_i32_0 = arith.constant 0 : i32
    %c0_i32_1 = arith.constant 0 : i32
    return %c0_i32, %c0_i32_0 : i32, i32
  }
  func.func @transform_2(%arg0: i32) -> (i32, i32) {
    %c0_i32 = arith.constant 0 : i32
    %c0_i32_0 = arith.constant 0 : i32
    %c0_i32_1 = arith.constant 0 : i32
    return %c0_i32, %c0_i32_0 : i32, i32
  }
  func.func @transform_3(%arg0: i32) -> (i32, i32, i32, i32) {
    %c0_i32 = arith.constant 0 : i32
    %c0_i32_0 = arith.constant 0 : i32
    %c0_i32_1 = arith.constant 0 : i32
    %c0_i32_2 = arith.constant 0 : i32
    return %arg0, %c0_i32, %c0_i32_0, %c0_i32_1 : i32, i32, i32, i32
  }
}

module attributes {stable_mosaic.version = 11 : i64} {
  func.func @_fc_head_kernel(%arg0: i32, %arg1: memref<2x450xbf16, #tpu.memory_space<vmem>>, %arg2: memref<450x512xbf16, #tpu.memory_space<vmem>>, %arg3: memref<512x128xbf16, #tpu.memory_space<vmem>>, %arg4: memref<2x128xf32, #tpu.memory_space<vmem>>) attributes {dimension_semantics = [#tpu.dimension_semantics<arbitrary>], iteration_bounds = array<i64: 1>, scalar_prefetch = 0 : i64, scratch_operands = 0 : i64, tpu.core_type = #tpu.core_type<tc>, window_params = [{pipeline_mode = #tpu.pipeline_mode<synchronous>, transform_indices = @transform_0, window_bounds = array<i64: 2, 450>}, {pipeline_mode = #tpu.pipeline_mode<synchronous>, transform_indices = @transform_1, window_bounds = array<i64: 450, 512>}, {pipeline_mode = #tpu.pipeline_mode<synchronous>, transform_indices = @transform_2, window_bounds = array<i64: 512, 128>}, {pipeline_mode = #tpu.pipeline_mode<synchronous>, transform_indices = @transform_3, window_bounds = array<i64: 2, 128>}]} {
    %c0 = arith.constant 0 : index
    %c0_0 = arith.constant 0 : index
    %0 = vector.load %arg1[%c0, %c0_0] : memref<2x450xbf16, #tpu.memory_space<vmem>>, vector<2x450xbf16>
    %c0_1 = arith.constant 0 : index
    %c0_2 = arith.constant 0 : index
    %1 = vector.load %arg2[%c0_1, %c0_2] : memref<450x512xbf16, #tpu.memory_space<vmem>>, vector<450x512xbf16>
    %cst = arith.constant dense<0.000000e+00> : vector<2x512xf32>
    %2 = tpu.matmul %0, %1, %cst {dimension_numbers = #tpu.dot_dimension_numbers<[1], [0], [0], [1], [0, 0, 1, 1], [], []>} : vector<2x450xbf16>, vector<450x512xbf16>, vector<2x512xf32> -> vector<2x512xf32>
    %cst_3 = arith.constant 0.000000e+00 : f32
    %3 = vector.broadcast %cst_3 : f32 to vector<2x512xf32>
    %4 = arith.maximumf %2, %3 : vector<2x512xf32>
    %5 = arith.truncf %4 : vector<2x512xf32> to vector<2x512xbf16>
    %c0_4 = arith.constant 0 : index
    %c0_5 = arith.constant 0 : index
    %6 = vector.load %arg3[%c0_4, %c0_5] : memref<512x128xbf16, #tpu.memory_space<vmem>>, vector<512x128xbf16>
    %cst_6 = arith.constant dense<0.000000e+00> : vector<2x128xf32>
    %7 = tpu.matmul %5, %6, %cst_6 {dimension_numbers = #tpu.dot_dimension_numbers<[1], [0], [0], [1], [0, 0, 1, 1], [], []>} : vector<2x512xbf16>, vector<512x128xbf16>, vector<2x128xf32> -> vector<2x128xf32>
    %8 = tpu.iota {dimensions = array<i32: 1>} : vector<2x128xi32>
    %c10_i32 = arith.constant 10 : i32
    %9 = vector.broadcast %c10_i32 : i32 to vector<2x128xi32>
    %10 = arith.cmpi slt, %8, %9 : vector<2x128xi32>
    %cst_7 = arith.constant -1.000000e+30 : f32
    %11 = vector.broadcast %cst_7 : f32 to vector<2x128xf32>
    %12 = arith.select %10, %7, %11 : vector<2x128xi1>, vector<2x128xf32>
    %cst_8 = arith.constant dense<0xFF800000> : vector<2xf32>
    %13 = vector.multi_reduction <maximumf>, %12, %cst_8 [1] : vector<2x128xf32> to vector<2xf32>
    %14 = vector.shape_cast %13 : vector<2xf32> to vector<2x1xf32>
    %15 = vector.broadcast %14 : vector<2x1xf32> to vector<2x128xf32>
    %16 = arith.subf %12, %15 : vector<2x128xf32>
    %17 = math.exp %16 : vector<2x128xf32>
    %cst_9 = arith.constant dense<0.000000e+00> : vector<2xf32>
    %18 = vector.multi_reduction <add>, %17, %cst_9 [1] : vector<2x128xf32> to vector<2xf32>
    %19 = vector.shape_cast %18 : vector<2xf32> to vector<2x1xf32>
    %20 = math.log %19 : vector<2x1xf32>
    %21 = vector.broadcast %20 : vector<2x1xf32> to vector<2x128xf32>
    %22 = arith.subf %16, %21 : vector<2x128xf32>
    %c0_10 = arith.constant 0 : index
    %c0_11 = arith.constant 0 : index
    %23 = vector.load %arg4[%c0_10, %c0_11] : memref<2x128xf32, #tpu.memory_space<vmem>>, vector<2x128xf32>
    tpu.vector_store %arg4[%c0_10, %c0_11], %22 {strides = array<i32>} : memref<2x128xf32, #tpu.memory_space<vmem>>, vector<2x128xf32>,
    return
  }
  func.func @transform_0(%arg0: i32) -> (i32, i32) {
    %c0_i32 = arith.constant 0 : i32
    %c0_i32_0 = arith.constant 0 : i32
    %c0_i32_1 = arith.constant 0 : i32
    return %c0_i32, %c0_i32_0 : i32, i32
  }
  func.func @transform_1(%arg0: i32) -> (i32, i32) {
    %c0_i32 = arith.constant 0 : i32
    %c0_i32_0 = arith.constant 0 : i32
    %c0_i32_1 = arith.constant 0 : i32
    return %c0_i32, %c0_i32_0 : i32, i32
  }
  func.func @transform_2(%arg0: i32) -> (i32, i32) {
    %c0_i32 = arith.constant 0 : i32
    %c0_i32_0 = arith.constant 0 : i32
    %c0_i32_1 = arith.constant 0 : i32
    return %c0_i32, %c0_i32_0 : i32, i32
  }
  func.func @transform_3(%arg0: i32) -> (i32, i32) {
    %c0_i32 = arith.constant 0 : i32
    %c0_i32_0 = arith.constant 0 : i32
    %c0_i32_1 = arith.constant 0 : i32
    return %c0_i32, %c0_i32_0 : i32, i32
  }
}

</mosaic_0001>

<bundles_post_ra>
// kernel: mnist_net_forward.3
= control target key start
LH: loop header
LB: loop body
LE: loop exit
PB: predicated region body
PF: predicated region fallthrough
CT: control target
= control target key end

     0   :  { %s1573_s12 = smov 0   ;;  %s2093_s0 = inlined_call_operand.vmem [shape: bf16[2,576,25], index: 0, kind: input, shape index: {}]   ;;  %s2094_s1 = inlined_call_operand.vmem [shape: bf16[25,128], index: 1, kind: input, shape index: {}]   ;;  %s2095_s2 = inlined_call_operand.vmem [shape: f32[1,128], index: 2, kind: input, shape index: {}]   ;;  %s2096_s3 = inlined_call_operand.vmem [shape: bf16[2,11,11,128], index: 3, kind: output, shape index: {}]  }
   0x1 LB: > { %s1290_s13 = sadd.s32 4294967295, %s1550_s12   ;;  %p1294_p0 = scmp.ge.s32.totalorder %s1550_s12, 1  ;;  %s1550_s12 = sphi %s1573_s12, %s13_s12  }
   0x2   : > { %p137_p1 = scmp.lt.s32.totalorder %s1550_s12, 3 }
   0x4   : > { %p138_p2 = pnand %p1294_p0, %p137_p1 }
   0x5   : > { %p161_p3 = scmp.lt.s32.totalorder (!%p138_p2), %s1290_s13, 1 }
   0x6   : > { %141 = sbr.rel (%p138_p2) target bundleno = 318 (0x13e), region = 32 }
   0xb   : > { %v1447_v0 = vld [vmem:[%s2094_s1 + $0x8] sm:$0xf]  ;;  %v1524_v1 = vld [vmem:[%s2094_s1 + $0x8] sm:$0x10]  ;;  %vm552_vm0 = vcmask 1043456   ;;  %vm553_vm1 = vcmask 1044480  }
   0xc   : > { %v1448_v2 = vor.u32 %v1524_v1, %v1447_v0  ;;  %v1552_v3 = vmov 65535   ;;  %s2100_s13 = smov (!%p161_p3, %s1290_s13), 1  ;;  %v1523_v7 = vld [vmem:[%s2094_s1] sm:$0xff]  ;;  %vm443_vm2 = vcmask 203776   ;;  %vm1189_vm3 = vcmask 1041408  }
   0xd   : > { %v554_v4 = vsel %vm552_vm0, 4294967295, %v1552_v3  ;;  %s1531_s18 = smul.u32 288, %s2100_s13  ;;  %v1665_v40 = vld [vmem:[%s2095_s2] ss:$0 sm:$0xff]  ;;  %vm1190_vm4 = vsmask.f32 1280 }
   0xe   : > { %v555_v5 = vsel %vm553_vm1, %v554_v4, 0  ;;  %s1532_s26 = smul.u32 88, %s2100_s13  ;;  %vm1874_vm5 = vmand %vm1189_vm3, %vm1190_vm4 }
   0xf   : > { %v557_v6 = vand.u32 %v1448_v2, %v555_v5  ;;  %s1596_s23 = scalar_lea.vmem %s2093_s0, %s1531_s18 }
  0x10   : > { %v1487_v8 = vld [vmem:[%s1596_s23] sm:$0xff]  ;;  %v1496_v9 = vld [vmem:[%s1596_s23 + $0x48] sm:$0xff]  ;;  %v1505_v10 = vld [vmem:[%s1596_s23 + $0x90] sm:$0xff]  ;;  %s1838_s29 = scalar_lea.vmem %s2096_s3, %s1532_s26 }
  0x11   : > { %565 = vmatpush.bf16.msra.mxu0 %v557_v6  ;;  %1525 = vmatpush.bf16.msra.mxu1 %v557_v6  ;;  %v1514_v11 = vld [vmem:[%s1596_s23 + $0xd8] sm:$0xff]  ;;  %v1488_v12 = vld [vmem:[%s1596_s23 + $0x8] sm:$0xff]  ;;  %v1497_v13 = vld [vmem:[%s1596_s23 + $0x50] sm:$0xff] }
  0x12   : > { %1526 = vmatpush.bf16.msra.mxu2 %v557_v6  ;;  %1527 = vmatpush.bf16.msra.mxu3 %v557_v6  ;;  %v1506_v14 = vld [vmem:[%s1596_s23 + $0x98] sm:$0xff]  ;;  %v1515_v15 = vld [vmem:[%s1596_s23 + $0xe0] sm:$0xff]  ;;  %v1489_v16 = vld [vmem:[%s1596_s23 + $0x10] sm:$0xff] }
  0x13   : > { %v1498_v17 = vld [vmem:[%s1596_s23 + $0x58] sm:$0xff]  ;;  %v1507_v18 = vld [vmem:[%s1596_s23 + $0xa0] sm:$0xff]  ;;  %v1516_v19 = vld [vmem:[%s1596_s23 + $0xe8] sm:$0xff] }
  0x14   : > { %v1490_v20 = vld [vmem:[%s1596_s23 + $0x18] sm:$0xff]  ;;  %v1499_v21 = vld [vmem:[%s1596_s23 + $0x60] sm:$0xff]  ;;  %v1508_v22 = vld [vmem:[%s1596_s23 + $0xa8] sm:$0xff] }
  0x15   : > { %566 = vmatpush.bf16.msra.mxu0 %v1523_v7  ;;  %1528 = vmatpush.bf16.msra.mxu1 %v1523_v7  ;;  %v1517_v23 = vld [vmem:[%s1596_s23 + $0xf0] sm:$0xff]  ;;  %v1491_v24 = vld [vmem:[%s1596_s23 + $0x20] sm:$0xff]  ;;  %v1500_v25 = vld [vmem:[%s1596_s23 + $0x68] sm:$0xff] }
  0x16   : > { %1529 = vmatpush.bf16.msra.mxu2 %v1523_v7  ;;  %1530 = vmatpush.bf16.msra.mxu3 %v1523_v7  ;;  %v1509_v26 = vld [vmem:[%s1596_s23 + $0xb0] sm:$0xff]  ;;  %v1518_v27 = vld [vmem:[%s1596_s23 + $0xf8] sm:$0xff]  ;;  %v1492_v28 = vld [vmem:[%s1596_s23 + $0x28] sm:$0xff] }
  0x17   : > { %v1501_v29 = vld [vmem:[%s1596_s23 + $0x70] sm:$0xff]  ;;  %v1510_v30 = vld [vmem:[%s1596_s23 + $0xb8] sm:$0xff]  ;;  %v1519_v31 = vld [vmem:[%s1596_s23 + $0x100] sm:$0xff] }
  0x18   : > { %1449 = vmatmul.msk.bf16.vlgmr.msra.gmra.mxu0 %vm443_vm2, %v1487_v8  ;;  %1458 = vmatmul.msk.bf16.vlgmr.msra.gmra.mxu1 %vm443_vm2, %v1496_v9  ;;  %v1493_v32 = vld [vmem:[%s1596_s23 + $0x30] sm:$0xff]  ;;  %v1502_v33 = vld [vmem:[%s1596_s23 + $0x78] sm:$0xff]  ;;  %v1511_v34 = vld [vmem:[%s1596_s23 + $0xc0] sm:$0xff] }
  0x19   : > { %1467 = vmatmul.msk.bf16.vlgmr.msra.gmra.mxu2 %vm443_vm2, %v1505_v10  ;;  %1476 = vmatmul.msk.bf16.vlgmr.msra.gmra.mxu3 %vm443_vm2, %v1514_v11  ;;  %v1520_v35 = vld [vmem:[%s1596_s23 + $0x108] sm:$0xff]  ;;  %v1494_v36 = vld [vmem:[%s1596_s23 + $0x38] sm:$0xff]  ;;  %v1503_v37 = vld [vmem:[%s1596_s23 + $0x80] sm:$0xff] }
  0x1a   : > { %v1512_v38 = vld [vmem:[%s1596_s23 + $0xc8] sm:$0xff]  ;;  %v1521_v39 = vld [vmem:[%s1596_s23 + $0x110] sm:$0xff]  ;;  %v1495_v41 = vld [vmem:[%s1596_s23 + $0x40] sm:$0xff] }
  0x1b   : > { %v1504_v42 = vld [vmem:[%s1596_s23 + $0x88] sm:$0xff]  ;;  %v1513_v45 = vld [vmem:[%s1596_s23 + $0xd0] sm:$0xff]  ;;  %v1522_v46 = vld [vmem:[%s1596_s23 + $0x118] sm:$0xff] }
  0x28   : > { %1450 = vmatmul.msk.bf16.gmra.mxu0 %vm443_vm2, %v1488_v12  ;;  %1459 = vmatmul.msk.bf16.gmra.mxu1 %vm443_vm2, %v1497_v13 }
  0x29   : > { %1468 = vmatmul.msk.bf16.gmra.mxu2 %vm443_vm2, %v1506_v14  ;;  %1477 = vmatmul.msk.bf16.gmra.mxu3 %vm443_vm2, %v1515_v15 }
  0x38   : > { %1451 = vmatmul.msk.bf16.gmra.mxu0 %vm443_vm2, %v1489_v16  ;;  %1460 = vmatmul.msk.bf16.gmra.mxu1 %vm443_vm2, %v1498_v17 }
  0x39   : > { %1469 = vmatmul.msk.bf16.gmra.mxu2 %vm443_vm2, %v1507_v18  ;;  %1478 = vmatmul.msk.bf16.gmra.mxu3 %vm443_vm2, %v1516_v19 }
  0x48   : > { %1452 = vmatmul.msk.bf16.gmra.mxu0 %vm443_vm2, %v1490_v20  ;;  %1461 = vmatmul.msk.bf16.gmra.mxu1 %vm443_vm2, %v1499_v21 }
  0x49   : > { %1470 = vmatmul.msk.bf16.gmra.mxu2 %vm443_vm2, %v1508_v22  ;;  %1479 = vmatmul.msk.bf16.gmra.mxu3 %vm443_vm2, %v1517_v23 }
  0x58   : > { %1453 = vmatmul.msk.bf16.gmra.mxu0 %vm443_vm2, %v1491_v24  ;;  %1462 = vmatmul.msk.bf16.gmra.mxu1 %vm443_vm2, %v1500_v25 }
  0x59   : > { %1471 = vmatmul.msk.bf16.gmra.mxu2 %vm443_vm2, %v1509_v26  ;;  %1480 = vmatmul.msk.bf16.gmra.mxu3 %vm443_vm2, %v1518_v27 }
  0x68   : > { %1454 = vmatmul.msk.bf16.gmra.mxu0 %vm443_vm2, %v1492_v28  ;;  %1463 = vmatmul.msk.bf16.gmra.mxu1 %vm443_vm2, %v1501_v29 }
  0x69   : > { %1472 = vmatmul.msk.bf16.gmra.mxu2 %vm443_vm2, %v1510_v30  ;;  %1481 = vmatmul.msk.bf16.gmra.mxu3 %vm443_vm2, %v1519_v31 }
  0x78   : > { %1455 = vmatmul.msk.bf16.gmra.mxu0 %vm443_vm2, %v1493_v32  ;;  %1464 = vmatmul.msk.bf16.gmra.mxu1 %vm443_vm2, %v1502_v33 }
  0x79   : > { %1473 = vmatmul.msk.bf16.gmra.mxu2 %vm443_vm2, %v1511_v34  ;;  %1482 = vmatmul.msk.bf16.gmra.mxu3 %vm443_vm2, %v1520_v35 }
  0x88   : > { %1456 = vmatmul.msk.bf16.gmra.mxu0 %vm443_vm2, %v1494_v36  ;;  %1465 = vmatmul.msk.bf16.gmra.mxu1 %vm443_vm2, %v1503_v37 }
  0x89   : > { %1474 = vmatmul.msk.bf16.gmra.mxu2 %vm443_vm2, %v1512_v38  ;;  %1483 = vmatmul.msk.bf16.gmra.mxu3 %vm443_vm2, %v1521_v39 }
  0x95   : > { %v568_v43 = vpop.f32.mrf.mxu0  ;;  %v613_v44 = vpop.f32.mrf.mxu1 }
  0x96   : > { %v1672_v47 = vadd.f32 %v1665_v40, %v568_v43  ;;  %v1675_v48 = vadd.f32 %v1665_v40, %v613_v44 }
  0x98   : > { %v748_v49 = vmax.f32 %v1672_v47, 0.0  ;;  %v766_v50 = vmax.f32 %v1675_v48, 0.0  ;;  %1457 = vmatmul.msk.bf16.gmra.mxu0 %vm443_vm2, %v1495_v41  ;;  %1466 = vmatmul.msk.bf16.gmra.mxu1 %vm443_vm2, %v1504_v42 }
  0x99   : > { %1475 = vmatmul.msk.bf16.gmra.mxu2 %vm443_vm2, %v1513_v45  ;;  %1484 = vmatmul.msk.bf16.gmra.mxu3 %vm443_vm2, %v1522_v46 }
  0x9a   : > { %820 = vst [vmem:[#allocation2] sm:$0xff] %v748_v49 }
  0x9b   : > { %838 = vst [vmem:[#allocation2 + $0x90] sm:$0xff] %v766_v50 }
  0x9c   : > { %v658_v51 = vpop.f32.mrf.mxu2  ;;  %v703_v52 = vpop.f32.mrf.mxu3 }
  0x9d   : > { %v1688_v53 = vadd.f32 %v1665_v40, %v658_v51  ;;  %v1691_v54 = vadd.f32 %v1665_v40, %v703_v52  ;;  %v570_v55 = vpop.f32.mrf.mxu0  ;;  %v615_v56 = vpop.f32.mrf.mxu1 }
  0x9e   : > { %v571_v57 = vadd.f32 %v1665_v40, %v570_v55  ;;  %v616_v58 = vadd.f32 %v1665_v40, %v615_v56 }
  0x9f   : > { %v784_v59 = vmax.f32 %v1688_v53, 0.0  ;;  %v802_v60 = vmax.f32 %v1691_v54, 0.0 }
  0xa0   : > { %v749_v61 = vmax.f32 %v571_v57, 0.0  ;;  %v767_v62 = vmax.f32 %v616_v58, 0.0 }
  0xa1   : > { %856 = vst [vmem:[#allocation2 + $0x120] sm:$0xff] %v784_v59 }
  0xa2   : > { %874 = vst [vmem:[#allocation2 + $0x1b0] sm:$0xff] %v802_v60 }
  0xa3   : > { %821 = vst [vmem:[#allocation2 + $0x8] sm:$0xff] %v749_v61 }
  0xa4   : > { %839 = vst [vmem:[#allocation2 + $0x98] sm:$0xff] %v767_v62  ;;  %v660_v63 = vpop.f32.mrf.mxu2  ;;  %v705_v0 = vpop.f32.mrf.mxu3 }
  0xa5   : > { %v661_v1 = vadd.f32 %v1665_v40, %v660_v63  ;;  %v706_v2 = vadd.f32 %v1665_v40, %v705_v0  ;;  %v573_v3 = vpop.f32.mrf.mxu0  ;;  %v618_v4 = vpop.f32.mrf.mxu1 }
  0xa6   : > { %v574_v5 = vadd.f32 %v1665_v40, %v573_v3  ;;  %v619_v6 = vadd.f32 %v1665_v40, %v618_v4 }
  0xa7   : > { %v785_v7 = vmax.f32 %v661_v1, 0.0  ;;  %v803_v8 = vmax.f32 %v706_v2, 0.0 }
  0xa8   : > { %v750_v9 = vmax.f32 %v574_v5, 0.0  ;;  %v768_v10 = vmax.f32 %v619_v6, 0.0 }
  0xa9   : > { %857 = vst [vmem:[#allocation2 + $0x128] sm:$0xff] %v785_v7 }
  0xaa   : > { %875 = vst [vmem:[#allocation2 + $0x1b8] sm:$0xff] %v803_v8 }
  0xab   : > { %822 = vst [vmem:[#allocation2 + $0x10] sm:$0xff] %v750_v9 }
  0xac   : > { %840 = vst [vmem:[#allocation2 + $0xa0] sm:$0xff] %v768_v10  ;;  %v663_v11 = vpop.f32.mrf.mxu2  ;;  %v708_v12 = vpop.f32.mrf.mxu3 }
  0xad   : > { %v664_v13 = vadd.f32 %v1665_v40, %v663_v11  ;;  %v709_v14 = vadd.f32 %v1665_v40, %v708_v12  ;;  %v575_v15 = vpop.f32.mrf.mxu0  ;;  %v620_v16 = vpop.f32.mrf.mxu1 }
  0xae   : > { %v1708_v17 = vadd.f32 %v1665_v40, %v575_v15  ;;  %v1711_v18 = vadd.f32 %v1665_v40, %v620_v16 }
  0xaf   : > { %v786_v19 = vmax.f32 %v664_v13, 0.0  ;;  %v804_v20 = vmax.f32 %v709_v14, 0.0 }
  0xb0   : > { %v751_v21 = vmax.f32 %v1708_v17, 0.0  ;;  %v769_v22 = vmax.f32 %v1711_v18, 0.0 }
  0xb1   : > { %858 = vst [vmem:[#allocation2 + $0x130] sm:$0xff] %v786_v19  ;;  %v893_v19 = vld [vmem:[#allocation2 + $0x8] sm:$0x7] }
  0xb2   : > { %876 = vst [vmem:[#allocation2 + $0x1c0] sm:$0xff] %v804_v20  ;;  %v938_v16 = vld [vmem:[#allocation2 + $0xc] sm:$0xff]  ;;  %v939_v20 = vld [vmem:[#allocation2 + $0x14] sm:$0x7] }
  0xb3   : > { %823 = vst [vmem:[#allocation2 + $0x18] sm:$0xff] %v751_v21 }
  0xb4   : > { %841 = vst [vmem:[#allocation2 + $0xa8] sm:$0xff] %v769_v22  ;;  %v665_v23 = vpop.f32.mrf.mxu2  ;;  %v710_v24 = vpop.f32.mrf.mxu3 }
  0xb5   : > { %v1720_v25 = vadd.f32 %v1665_v40, %v665_v23  ;;  %v1723_v26 = vadd.f32 %v1665_v40, %v710_v24  ;;  %v578_v27 = vpop.f32.mrf.mxu0  ;;  %v623_v28 = vpop.f32.mrf.mxu1  ;;  %v950_v23 = vld [vmem:[#allocation2 + $0x9c] sm:$0xff]  ;;  %v905_v24 = vld [vmem:[#allocation2 + $0x98] sm:$0x7] }
  0xb6   : > { %v579_v29 = vadd.f32 %v1665_v40, %v578_v27  ;;  %v624_v30 = vadd.f32 %v1665_v40, %v623_v28  ;;  %v951_v27 = vld [vmem:[#allocation2 + $0xa4] sm:$0x7] }
  0xb7   : > { %v787_v31 = vmax.f32 %v1720_v25, 0.0  ;;  %v805_v32 = vmax.f32 %v1723_v26, 0.0 }
  0xb8   : > { %v752_v33 = vmax.f32 %v579_v29, 0.0  ;;  %v770_v34 = vmax.f32 %v624_v30, 0.0  ;;  %v917_v30 = vld [vmem:[#allocation2 + $0x128] sm:$0x7] }
  0xb9   : > { %859 = vst [vmem:[#allocation2 + $0x138] sm:$0xff] %v787_v31 }
  0xba   : > { %877 = vst [vmem:[#allocation2 + $0x1c8] sm:$0xff] %v805_v32 }
  0xbb   : > { %824 = vst [vmem:[#allocation2 + $0x20] sm:$0xff] %v752_v33  ;;  %v1767_v33 = vmax.f32 %v748_v49, %v938_v16  ;;  %v1008_v16 = vld [vmem:[#allocation2 + $0x121] sm:$0xff] }
  0xbc   : > { %842 = vst [vmem:[#allocation2 + $0xb0] sm:$0xff] %v770_v34  ;;  %v668_v35 = vpop.f32.mrf.mxu2  ;;  %v713_v36 = vpop.f32.mrf.mxu3  ;;  %v962_v34 = vld [vmem:[#allocation2 + $0x12c] sm:$0xff] }
  0xbd   : > { %v669_v37 = vadd.f32 %v1665_v40, %v668_v35  ;;  %v714_v38 = vadd.f32 %v1665_v40, %v713_v36  ;;  %v580_v39 = vpop.f32.mrf.mxu0  ;;  %v625_v41 = vpop.f32.mrf.mxu1  ;;  %v963_v35 = vld [vmem:[#allocation2 + $0x134] sm:$0x7]  ;;  %v1054_v48 = vmax.f32 %v784_v59, %v962_v34 }
  0xbe   : > { %v581_v42 = vadd.f32 %v1665_v40, %v580_v39  ;;  %v626_v43 = vadd.f32 %v1665_v40, %v625_v41  ;;  %v1771_v41 = vld [vmem:[#allocation2 + $0x1b8] sm:$0x7] }
  0xbf   : > { %v788_v44 = vmax.f32 %v669_v37, 0.0  ;;  %v806_v45 = vmax.f32 %v714_v38, 0.0  ;;  %v1799_v34 = vmax.f32 %v1054_v48, %v1008_v16 }
  0xc0   : > { %v753_v46 = vmax.f32 %v581_v42, 0.0  ;;  %v771_v51 = vmax.f32 %v626_v43, 0.0  ;;  %v1031_v42 = vmax.f32 %v893_v19, %v939_v20  ;;  %v1042_v43 = vmax.f32 %v766_v50, %v950_v23  ;;  %v1009_v19 = vld [vmem:[#allocation2 + $0x129] sm:$0x7] }
  0xc1   : > { %860 = vst [vmem:[#allocation2 + $0x140] sm:$0xff] %v788_v44  ;;  %v1055_v50 = vmax.f32 %v917_v30, %v963_v35 }
  0xc2   : > { %878 = vst [vmem:[#allocation2 + $0x1d0] sm:$0xff] %v806_v45  ;;  %v986_v18 = vld [vmem:[#allocation2 + $0x19] sm:$0xff] }
  0xc3   : > { %825 = vst [vmem:[#allocation2 + $0x28] sm:$0xff] %v753_v46  ;;  %v1777_v46 = vld [vmem:[#allocation2 + $0x1] sm:$0xff]  ;;  %v907_v23 = vld [vmem:[#allocation2 + $0xb0] sm:$0x7]  ;;  %v1801_v35 = vmax.f32 %v1055_v50, %v1009_v19 }
  0xc4   : > { %843 = vst [vmem:[#allocation2 + $0xb8] sm:$0xff] %v771_v51  ;;  %v670_v52 = vpop.f32.mrf.mxu2  ;;  %v715_v55 = vpop.f32.mrf.mxu3  ;;  %v985_v51 = vld [vmem:[#allocation2 + $0x9] sm:$0x7]  ;;  %v1076_v20 = vmax.f32 %v1767_v33, %v1777_v46  ;;  %v1021_v46 = vld [vmem:[#allocation2 + $0x1b9] sm:$0x7] }
  0xc5   : > { %v671_v56 = vadd.f32 %v1665_v40, %v670_v52  ;;  %v716_v57 = vadd.f32 %v1665_v40, %v715_v55  ;;  %v583_v58 = vpop.f32.mrf.mxu0  ;;  %v628_v61 = vpop.f32.mrf.mxu1  ;;  %v996_v52 = vld [vmem:[#allocation2 + $0x91] sm:$0xff]  ;;  %v1043_v55 = vmax.f32 %v905_v24, %v951_v27  ;;  %v1787_v53 = vmax.f32 %v1031_v42, %v985_v51 }
  0xc6   : > { %v1740_v62 = vadd.f32 %v1665_v40, %v583_v58  ;;  %v1743_v63 = vadd.f32 %v1665_v40, %v628_v61  ;;  %v1789_v59 = vmax.f32 %v1042_v43, %v996_v52  ;;  %v999_v25 = vld [vmem:[#allocation2 + $0xb1] sm:$0x7] }
  0xc7   : > { %v789_v0 = vmax.f32 %v671_v56, 0.0  ;;  %v807_v1 = vmax.f32 %v716_v57, 0.0  ;;  %v974_v56 = vld [vmem:[#allocation2 + $0x1bc] sm:$0xff]  ;;  %v1779_v57 = vld [vmem:[#allocation2 + $0x1c4] sm:$0x7] }
  0xc8   : > { %v754_v2 = vmax.f32 %v1740_v62, 0.0  ;;  %v772_v3 = vmax.f32 %v1743_v63, 0.0  ;;  %v1067_v27 = vmax.f32 %v1771_v41, %v1779_v57  ;;  %v998_v41 = vld [vmem:[#allocation2 + $0xa9] sm:$0xff]  ;;  %v1011_v57 = vld [vmem:[#allocation2 + $0x141] sm:$0x7] }
  0xc9   : > { %861 = vst [vmem:[#allocation2 + $0x148] sm:$0xff] %v789_v0 }
  0xca   : > { %879 = vst [vmem:[#allocation2 + $0x1d8] sm:$0xff] %v807_v1  ;;  %v940_v44 = vld [vmem:[#allocation2 + $0x24] sm:$0xff]  ;;  %v941_v45 = vld [vmem:[#allocation2 + $0x2c] sm:$0x7]  ;;  %v895_v1 = vld [vmem:[#allocation2 + $0x20] sm:$0x7] }
  0xcb   : > { %826 = vst [vmem:[#allocation2 + $0x30] sm:$0xff] %v754_v2  ;;  %v952_v58 = vld [vmem:[#allocation2 + $0xb4] sm:$0xff] }
  0xcc   : > { %844 = vst [vmem:[#allocation2 + $0xc0] sm:$0xff] %v772_v3  ;;  %v673_v4 = vpop.f32.mrf.mxu2  ;;  %v718_v5 = vpop.f32.mrf.mxu3  ;;  %v1044_v24 = vmax.f32 %v769_v22, %v952_v58  ;;  %v931_v22 = vld [vmem:[#allocation2 + $0x1d0] sm:$0x7] }
  0xcd   : > { %v1752_v6 = vadd.f32 %v1665_v40, %v673_v4  ;;  %v1755_v7 = vadd.f32 %v1665_v40, %v718_v5  ;;  %v585_v8 = vpop.f32.mrf.mxu0  ;;  %v630_v9 = vpop.f32.mrf.mxu1  ;;  %v953_v4 = vld [vmem:[#allocation2 + $0xbc] sm:$0x7] }
  0xce   : > { %v586_v10 = vadd.f32 %v1665_v40, %v585_v8  ;;  %v631_v11 = vadd.f32 %v1665_v40, %v630_v9  ;;  %v997_v9 = vld [vmem:[#allocation2 + $0x99] sm:$0x7]  ;;  %v1045_v30 = vmax.f32 %v907_v23, %v953_v4  ;;  %v1023_v4 = vld [vmem:[#allocation2 + $0x1d1] sm:$0x7] }
  0xcf   : > { %v790_v12 = vmax.f32 %v1752_v6, 0.0  ;;  %v808_v13 = vmax.f32 %v1755_v7, 0.0  ;;  %v1793_v17 = vmax.f32 %v1043_v55, %v997_v9 }
  0xd0   : > { %v755_v14 = vmax.f32 %v586_v10, 0.0  ;;  %v773_v15 = vmax.f32 %v631_v11, 0.0  ;;  %v1032_v10 = vmax.f32 %v751_v21, %v940_v44  ;;  %v1033_v11 = vmax.f32 %v895_v1, %v941_v45  ;;  %v1022_v1 = vld [vmem:[#allocation2 + $0x1c9] sm:$0xff] }
  0xd1   : > { %862 = vst [vmem:[#allocation2 + $0x150] sm:$0xff] %v790_v12  ;;  %v1066_v21 = vmax.f32 %v802_v60, %v974_v56  ;;  %v976_v33 = vld [vmem:[#allocation2 + $0x1d4] sm:$0xff]  ;;  %v977_v54 = vld [vmem:[#allocation2 + $0x1dc] sm:$0x7]  ;;  %v1817_v58 = vmax.f32 %v1045_v30, %v999_v25 }
  0xd2   : > { %880 = vst [vmem:[#allocation2 + $0x1e0] sm:$0xff] %v808_v13  ;;  %v1078_v42 = vmax.f32 %v1032_v10, %v986_v18  ;;  %v1068_v51 = vmax.f32 %v805_v32, %v976_v33  ;;  %v1010_v56 = vld [vmem:[#allocation2 + $0x139] sm:$0xff] }
  0xd3   : > { %827 = vst [vmem:[#allocation2 + $0x38] sm:$0xff] %v755_v14  ;;  %v964_v14 = vld [vmem:[#allocation2 + $0x144] sm:$0xff] }
  0xd4   : > { %845 = vst [vmem:[#allocation2 + $0xc8] sm:$0xff] %v773_v15  ;;  %v675_v28 = vpop.f32.mrf.mxu2  ;;  %v720_v29 = vpop.f32.mrf.mxu3  ;;  %v965_v15 = vld [vmem:[#allocation2 + $0x14c] sm:$0x7]  ;;  %v1122_v9 = vmax.f32 %v1076_v20, %v1078_v42 }
  0xd5   : > { %v676_v36 = vadd.f32 %v1665_v40, %v675_v28  ;;  %v721_v37 = vadd.f32 %v1665_v40, %v720_v29  ;;  %v588_v38 = vpop.f32.mrf.mxu0  ;;  %v633_v39 = vpop.f32.mrf.mxu1  ;;  %v987_v28 = vld [vmem:[#allocation2 + $0x21] sm:$0x7] }
  0xd6   : > { %v589_v47 = vadd.f32 %v1665_v40, %v588_v38  ;;  %v634_v49 = vadd.f32 %v1665_v40, %v633_v39  ;;  %v919_v29 = vld [vmem:[#allocation2 + $0x140] sm:$0x7]  ;;  %v1020_v39 = vld [vmem:[#allocation2 + $0x1b1] sm:$0xff]  ;;  %v1805_v43 = vmax.f32 %v1033_v11, %v987_v28 }
  0xd7   : > { %v791_v61 = vmax.f32 %v676_v36, 0.0  ;;  %v809_v0 = vmax.f32 %v721_v37, 0.0  ;;  %v1056_v36 = vmax.f32 %v787_v31, %v964_v14  ;;  %v1057_v37 = vmax.f32 %v919_v29, %v965_v15 }
  0xd8   : > { %v756_v5 = vmax.f32 %v589_v47, 0.0  ;;  %v774_v8 = vmax.f32 %v634_v49, 0.0  ;;  %v1090_v31 = vmax.f32 %v1044_v24, %v998_v41  ;;  %v1820_v50 = vmax.f32 %v1066_v21, %v1020_v39 }
  0xd9   : > { %863 = vst [vmem:[#allocation2 + $0x158] sm:$0xff] %v791_v61  ;;  %v1069_v61 = vmax.f32 %v931_v22, %v977_v54  ;;  %v1102_v26 = vmax.f32 %v1056_v36, %v1010_v56  ;;  %v1822_v32 = vmax.f32 %v1057_v37, %v1011_v57  ;;  %v1123_v11 = vmax.f32 %v1787_v53, %v1805_v43  ;;  %v1204_v57 = vld [vmem:[%s1838_s29 + $0x1c] sm:$0x3] }
  0xda   : > { %881 = vst [vmem:[#allocation2 + $0x1e8] sm:$0xff] %v809_v0  ;;  %v897_v10 = vld [vmem:[#allocation2 + $0x38] sm:$0x7]  ;;  %v1128_v14 = vmax.f32 %v1789_v59, %v1090_v31  ;;  %v1114_v15 = vmax.f32 %v1068_v51, %v1022_v1  ;;  %v1129_v24 = vmax.f32 %v1793_v17, %v1817_v58 }
  0xdb   : > { %828 = vst [vmem:[#allocation2 + $0x40] sm:$0xff] %v756_v5  ;;  %v1833_v21 = vmax.f32 %v1069_v61, %v1023_v4  ;;  %v909_v20 = vld [vmem:[#allocation2 + $0xc8] sm:$0x7]  ;;  %v1845_v30 = vmax.f32 %v1799_v34, %v1102_v26  ;;  %v1135_v33 = vmax.f32 %v1801_v35, %v1822_v32  ;;  %v988_v18 = vld [vmem:[#allocation2 + $0x31] sm:$0xff]  ;;  %v989_v22 = vld [vmem:[#allocation2 + $0x39] sm:$0x7] }
  0xdc   : > { %846 = vst [vmem:[#allocation2 + $0xd0] sm:$0xff] %v774_v8  ;;  %v678_v60 = vpop.f32.mrf.mxu2  ;;  %v723_v38 = vpop.f32.mrf.mxu3  ;;  %v1825_v8 = vmax.f32 %v1067_v27, %v1021_v46  ;;  %v1000_v54 = vld [vmem:[#allocation2 + $0xc1] sm:$0xff]  ;;  %v1140_v43 = vmax.f32 %v1820_v50, %v1114_v15  ;;  %v1228_v32 = vld [vmem:[%s1838_s29 + $0x4c] sm:$0x3] }
  0xdd   : > { %v679_v44 = vadd.f32 %v1665_v40, %v678_v60  ;;  %v724_v45 = vadd.f32 %v1665_v40, %v723_v38  ;;  %v590_v47 = vpop.f32.mrf.mxu0  ;;  %v635_v49 = vpop.f32.mrf.mxu1  ;;  %v1001_v60 = vld [vmem:[#allocation2 + $0xc9] sm:$0x7] }
  0xde   : > { %v1812_v52 = vadd.f32 %v1665_v40, %v590_v47  ;;  %v1815_v55 = vadd.f32 %v1665_v40, %v635_v49 }
  0xdf   : > { %v792_v0 = vmax.f32 %v679_v44, 0.0  ;;  %v810_v48 = vmax.f32 %v724_v45, 0.0  ;;  %v1192_v44 = vld [vmem:[%s1838_s29 + $0x4] sm:$0x3] }
  0xe0   : > { %v757_v5 = vmax.f32 %v1812_v52, 0.0  ;;  %v775_v23 = vmax.f32 %v1815_v55, 0.0  ;;  %v921_v46 = vld [vmem:[#allocation2 + $0x158] sm:$0x7] }
  0xe1   : > { %864 = vst [vmem:[#allocation2 + $0x160] sm:$0xff] %v792_v0  ;;  %v933_v25 = vld [vmem:[#allocation2 + $0x1e8] sm:$0x7]  ;;  %v1141_v0 = vmax.f32 %v1825_v8, %v1833_v21 }
  0xe2   : > { %v942_v16 = vld [vmem:[#allocation2 + $0x3c] sm:$0xff]  ;;  %v943_v19 = vld [vmem:[#allocation2 + $0x44] sm:$0x7]  ;;  %882 = vst [vmem:[#allocation2 + $0x1f0] sm:$0xff] %v810_v48 }
  0xe3   : > { %v1034_v53 = vmax.f32 %v754_v2, %v942_v16  ;;  %v1035_v27 = vmax.f32 %v897_v10, %v943_v19  ;;  %v954_v28 = vld [vmem:[#allocation2 + $0xcc] sm:$0xff]  ;;  %v955_v29 = vld [vmem:[#allocation2 + $0xd4] sm:$0x7]  ;;  %829 = vst [vmem:[#allocation2 + $0x48] sm:$0xff] %v757_v5  ;;  %v1024_v48 = vld [vmem:[#allocation2 + $0x1e1] sm:$0xff] }
  0xe4   : > { %v1046_v36 = vmax.f32 %v772_v3, %v954_v28  ;;  %v1047_v62 = vmax.f32 %v909_v20, %v955_v29  ;;  %847 = vst [vmem:[#allocation2 + $0xd8] sm:$0xff] %v775_v23  ;;  %v680_v2 = vpop.f32.mrf.mxu2  ;;  %v725_v37 = vpop.f32.mrf.mxu3 }
  0xe5   : > { %v1853_v38 = vmax.f32 %v1034_v53, %v988_v18  ;;  %v1855_v39 = vmax.f32 %v1035_v27, %v989_v22  ;;  %v1858_v41 = vadd.f32 %v1665_v40, %v680_v2  ;;  %v1861_v42 = vadd.f32 %v1665_v40, %v725_v37  ;;  %v593_v63 = vpop.f32.mrf.mxu0  ;;  %v638_v3 = vpop.f32.mrf.mxu1 }
  0xe6   : > { %v1865_v45 = vmax.f32 %v1046_v36, %v1000_v54  ;;  %v1867_v47 = vmax.f32 %v1047_v62, %v1001_v60  ;;  %v594_v49 = vadd.f32 %v1665_v40, %v593_v63  ;;  %v639_v10 = vadd.f32 %v1665_v40, %v638_v3 }
  0xe7   : > { %v1144_v31 = vmax.f32 %v1122_v9, %v1853_v38  ;;  %v1145_v51 = vmax.f32 %v1123_v11, %v1855_v39  ;;  %v793_v58 = vmax.f32 %v1858_v41, 0.0  ;;  %v811_v61 = vmax.f32 %v1861_v42, 0.0  ;;  %v1025_v11 = vld [vmem:[#allocation2 + $0x1e9] sm:$0x7] }
  0xe8   : > { %v1150_v1 = vmax.f32 %v1128_v14, %v1865_v45  ;;  %v1151_v4 = vmax.f32 %v1129_v24, %v1867_v47  ;;  %v966_v26 = vld [vmem:[#allocation2 + $0x15c] sm:$0xff]  ;;  %v967_v9 = vld [vmem:[#allocation2 + $0x164] sm:$0x7]  ;;  %v1012_v14 = vld [vmem:[#allocation2 + $0x151] sm:$0xff]  ;;  %v758_v36 = vmax.f32 %v594_v49, 0.0  ;;  %v776_v2 = vmax.f32 %v639_v10, 0.0 }
  0xe9   : > { %v1166_v15 = vpack.c.bf16 %v1144_v31, %v1144_v31  ;;  %v1167_v16 = vpack.c.bf16 %v1145_v51, %v1145_v51  ;;  %v1058_v19 = vmax.f32 %v790_v12, %v966_v26  ;;  %v1059_v20 = vmax.f32 %v921_v46, %v967_v9  ;;  %v978_v53 = vld [vmem:[#allocation2 + $0x1ec] sm:$0xff]  ;;  %v979_v21 = vld [vmem:[#allocation2 + $0x1f4] sm:$0x7]  ;;  %865 = vst [vmem:[#allocation2 + $0x168] sm:$0xff] %v793_v58  ;;  %v1013_v24 = vld [vmem:[#allocation2 + $0x159] sm:$0x7] }
  0xea   : > { %v1172_v27 = vpack.c.bf16 %v1150_v1, %v1150_v1  ;;  %v1173_v28 = vpack.c.bf16 %v1151_v4, %v1151_v4  ;;  %v1070_v29 = vmax.f32 %v808_v13, %v978_v53  ;;  %v1071_v18 = vmax.f32 %v933_v25, %v979_v21  ;;  %883 = vst [vmem:[#allocation2 + $0x1f8] sm:$0xff] %v811_v61  ;;  %v1216_v46 = vld [vmem:[%s1838_s29 + $0x34] sm:$0x3] }
  0xeb   : > { %1188 = vst [vmem:[%s1838_s29] sm:$0xf] %v1166_v15  ;;  %v1193_v6 = vsel %vm1874_vm5, %v1167_v16, %v1192_v44  ;;  %v1897_v12 = vmax.f32 %v1058_v19, %v1012_v14  ;;  %v1899_v22 = vmax.f32 %v1059_v20, %v1013_v24 }
  0xec   : > { %1194 = vst [vmem:[%s1838_s29 + $0x4] sm:$0x3] %v1193_v6  ;;  %v1205_v7 = vsel %vm1874_vm5, %v1173_v28, %v1204_v57  ;;  %v1904_v13 = vmax.f32 %v1070_v29, %v1024_v48  ;;  %v1906_v62 = vmax.f32 %v1071_v18, %v1025_v11  ;;  %v683_v37 = vpop.f32.mrf.mxu2  ;;  %v728_v54 = vpop.f32.mrf.mxu3 }
  0xed   : > { %1203 = vst [vmem:[%s1838_s29 + $0x18] sm:$0xf] %v1172_v27  ;;  %v1156_v60 = vmax.f32 %v1845_v30, %v1897_v12  ;;  %v1157_v63 = vmax.f32 %v1135_v33, %v1899_v22  ;;  %v684_v3 = vadd.f32 %v1665_v40, %v683_v37  ;;  %v595_v44 = vpop.f32.mrf.mxu0  ;;  %v640_v49 = vpop.f32.mrf.mxu1  ;;  %v729_v51 = vadd.f32 %v1665_v40, %v728_v54 }
  0xee   : > { %1206 = vst [vmem:[%s1838_s29 + $0x1c] sm:$0x3] %v1205_v7  ;;  %v1162_v25 = vmax.f32 %v1140_v43, %v1904_v13  ;;  %v1163_v31 = vmax.f32 %v1141_v0, %v1906_v62  ;;  %v596_v33 = vadd.f32 %v1665_v40, %v595_v44  ;;  %v641_v4 = vadd.f32 %v1665_v40, %v640_v49 }
  0xef   : > { %v1178_v30 = vpack.c.bf16 %v1156_v60, %v1156_v60  ;;  %v1179_v57 = vpack.c.bf16 %v1157_v63, %v1157_v63  ;;  %830 = vst [vmem:[#allocation2 + $0x50] sm:$0xff] %v758_v36  ;;  %v794_v0 = vmax.f32 %v684_v3, 0.0  ;;  %v812_v9 = vmax.f32 %v729_v51, 0.0 }
  0xf0   : > { %v1184_v48 = vpack.c.bf16 %v1162_v25, %v1162_v25  ;;  %v1185_v1 = vpack.c.bf16 %v1163_v31, %v1163_v31  ;;  %848 = vst [vmem:[#allocation2 + $0xe0] sm:$0xff] %v776_v2  ;;  %v759_v10 = vmax.f32 %v596_v33, 0.0  ;;  %v777_v11 = vmax.f32 %v641_v4, 0.0 }
  0xf1   : > { %1215 = vst [vmem:[%s1838_s29 + $0x30] sm:$0xf] %v1178_v30  ;;  %v1217_v43 = vsel %vm1874_vm5, %v1179_v57, %v1216_v46 }
  0xf2   : > { %1218 = vst [vmem:[%s1838_s29 + $0x34] sm:$0x3] %v1217_v43  ;;  %v1229_v26 = vsel %vm1874_vm5, %v1185_v1, %v1228_v32 }
  0xf3   : > { %1227 = vst [vmem:[%s1838_s29 + $0x48] sm:$0xf] %v1184_v48 }
  0xf4   : > { %1230 = vst [vmem:[%s1838_s29 + $0x4c] sm:$0x3] %v1229_v26  ;;  %v685_v15 = vpop.f32.mrf.mxu2  ;;  %v730_v16 = vpop.f32.mrf.mxu3 }
  0xf5   : > { %866 = vst [vmem:[#allocation2 + $0x170] sm:$0xff] %v794_v0  ;;  %v686_v19 = vadd.f32 %v1665_v40, %v685_v15  ;;  %v731_v20 = vadd.f32 %v1665_v40, %v730_v16  ;;  %v598_v53 = vpop.f32.mrf.mxu0  ;;  %v643_v21 = vpop.f32.mrf.mxu1 }
  0xf6   : > { %884 = vst [vmem:[#allocation2 + $0x200] sm:$0xff] %v812_v9  ;;  %v1935_v14 = vadd.f32 %v1665_v40, %v598_v53  ;;  %v1938_v24 = vadd.f32 %v1665_v40, %v643_v21  ;;  %v899_v15 = vld [vmem:[#allocation2 + $0x50] sm:$0x7] }
  0xf7   : > { %831 = vst [vmem:[#allocation2 + $0x58] sm:$0xff] %v759_v10  ;;  %v795_v27 = vmax.f32 %v686_v19, 0.0  ;;  %v813_v28 = vmax.f32 %v731_v20, 0.0  ;;  %v911_v53 = vld [vmem:[#allocation2 + $0xe0] sm:$0x7] }
  0xf8   : > { %849 = vst [vmem:[#allocation2 + $0xe8] sm:$0xff] %v777_v11  ;;  %v760_v29 = vmax.f32 %v1935_v14, 0.0  ;;  %v778_v18 = vmax.f32 %v1938_v24, 0.0 }
  0xf9   : > { %867 = vst [vmem:[#allocation2 + $0x178] sm:$0xff] %v795_v27 }
  0xfa   : > { %885 = vst [vmem:[#allocation2 + $0x208] sm:$0xff] %v813_v28 }
  0xfb   : > { %832 = vst [vmem:[#allocation2 + $0x60] sm:$0xff] %v760_v29 }
  0xfc   : > { %v688_v6 = vpop.f32.mrf.mxu2  ;;  %v733_v36 = vpop.f32.mrf.mxu3  ;;  %850 = vst [vmem:[#allocation2 + $0xf0] sm:$0xff] %v778_v18  ;;  %v923_v21 = vld [vmem:[#allocation2 + $0x170] sm:$0x7] }
  0xfd   : > { %v1947_v7 = vadd.f32 %v1665_v40, %v688_v6  ;;  %v1950_v2 = vadd.f32 %v1665_v40, %v733_v36  ;;  %v600_v37 = vpop.f32.mrf.mxu0  ;;  %v645_v54 = vpop.f32.mrf.mxu1  ;;  %v935_v6 = vld [vmem:[#allocation2 + $0x200] sm:$0x7] }
  0xfe   : > { %v601_v60 = vadd.f32 %v1665_v40, %v600_v37  ;;  %v646_v63 = vadd.f32 %v1665_v40, %v645_v54  ;;  %v944_v33 = vld [vmem:[#allocation2 + $0x54] sm:$0xff]  ;;  %v945_v4 = vld [vmem:[#allocation2 + $0x5c] sm:$0x7]  ;;  %v1027_v42 = vld [vmem:[#allocation2 + $0x201] sm:$0x7] }
  0xff   : > { %v796_v3 = vmax.f32 %v1947_v7, 0.0  ;;  %v814_v44 = vmax.f32 %v1950_v2, 0.0  ;;  %v956_v26 = vld [vmem:[#allocation2 + $0xe4] sm:$0xff]  ;;  %v957_v9 = vld [vmem:[#allocation2 + $0xec] sm:$0x7]  ;;  %v1036_v16 = vmax.f32 %v757_v5, %v944_v33  ;;  %v1037_v27 = vmax.f32 %v899_v15, %v945_v4 }
 0x100   : > { %v761_v49 = vmax.f32 %v601_v60, 0.0  ;;  %v779_v46 = vmax.f32 %v646_v63, 0.0  ;;  %v968_v19 = vld [vmem:[#allocation2 + $0x174] sm:$0xff]  ;;  %v969_v20 = vld [vmem:[#allocation2 + $0x17c] sm:$0x7]  ;;  %v1048_v36 = vmax.f32 %v775_v23, %v956_v26  ;;  %v1049_v37 = vmax.f32 %v911_v53, %v957_v9  ;;  %v990_v60 = vld [vmem:[#allocation2 + $0x49] sm:$0xff] }
 0x101   : > { %868 = vst [vmem:[#allocation2 + $0x180] sm:$0xff] %v796_v3  ;;  %v980_v28 = vld [vmem:[#allocation2 + $0x204] sm:$0xff]  ;;  %v981_v54 = vld [vmem:[#allocation2 + $0x20c] sm:$0x7]  ;;  %v1060_v52 = vmax.f32 %v793_v58, %v968_v19  ;;  %v1061_v5 = vmax.f32 %v923_v21, %v969_v20  ;;  %v1015_v4 = vld [vmem:[#allocation2 + $0x171] sm:$0x7] }
 0x102   : > { %886 = vst [vmem:[#allocation2 + $0x210] sm:$0xff] %v814_v44  ;;  %v1014_v33 = vld [vmem:[#allocation2 + $0x169] sm:$0xff]  ;;  %v1073_v58 = vmax.f32 %v935_v6, %v981_v54  ;;  %v1026_v9 = vld [vmem:[#allocation2 + $0x1f9] sm:$0xff] }
 0x103   : > { %833 = vst [vmem:[#allocation2 + $0x68] sm:$0xff] %v761_v49 }
 0x104   : > { %851 = vst [vmem:[#allocation2 + $0xf8] sm:$0xff] %v779_v46  ;;  %v690_v25 = vpop.f32.mrf.mxu2  ;;  %v735_v31 = vpop.f32.mrf.mxu3  ;;  %v991_v46 = vld [vmem:[#allocation2 + $0x51] sm:$0x7]  ;;  %v1985_v21 = vmax.f32 %v1073_v58, %v1027_v42  ;;  %v1208_v42 = vld [vmem:[%s1838_s29 + $0x24] sm:$0x3] }
 0x105   : > { %v691_v51 = vadd.f32 %v1665_v40, %v690_v25  ;;  %v736_v30 = vadd.f32 %v1665_v40, %v735_v31  ;;  %v603_v57 = vpop.f32.mrf.mxu0  ;;  %v648_v32 = vpop.f32.mrf.mxu1  ;;  %v1082_v25 = vmax.f32 %v1036_v16, %v990_v60  ;;  %v1072_v31 = vmax.f32 %v811_v61, %v980_v28 }
 0x106   : > { %v604_v48 = vadd.f32 %v1665_v40, %v603_v57  ;;  %v649_v1 = vadd.f32 %v1665_v40, %v648_v32  ;;  %v1002_v57 = vld [vmem:[#allocation2 + $0xd9] sm:$0xff]  ;;  %v1003_v32 = vld [vmem:[#allocation2 + $0xe1] sm:$0x7]  ;;  %v1083_v41 = vmax.f32 %v1037_v27, %v991_v46 }
 0x107   : > { %v797_v43 = vmax.f32 %v691_v51, 0.0  ;;  %v815_v0 = vmax.f32 %v736_v30, 0.0  ;;  %v1094_v61 = vmax.f32 %v1048_v36, %v1002_v57  ;;  %v1118_v16 = vmax.f32 %v1072_v31, %v1026_v9 }
 0x108   : > { %v762_v10 = vmax.f32 %v604_v48, 0.0  ;;  %v780_v11 = vmax.f32 %v649_v1, 0.0  ;;  %v1124_v20 = vmax.f32 %v1853_v38, %v1082_v25  ;;  %v1125_v53 = vmax.f32 %v1855_v39, %v1083_v41 }
 0x109   : > { %869 = vst [vmem:[#allocation2 + $0x188] sm:$0xff] %v797_v43  ;;  %v1095_v43 = vmax.f32 %v1049_v37, %v1003_v32  ;;  %v1130_v36 = vmax.f32 %v1865_v45, %v1094_v61  ;;  %v1142_v25 = vmax.f32 %v1904_v13, %v1118_v16 }
 0x10a   : > { %887 = vst [vmem:[#allocation2 + $0x218] sm:$0xff] %v815_v0  ;;  %v901_v19 = vld [vmem:[#allocation2 + $0x68] sm:$0x7] }
 0x10b   : > { %834 = vst [vmem:[#allocation2 + $0x70] sm:$0xff] %v762_v10  ;;  %v1106_v10 = vmax.f32 %v1060_v52, %v1014_v33  ;;  %v1131_v37 = vmax.f32 %v1867_v47, %v1095_v43  ;;  %v913_v54 = vld [vmem:[#allocation2 + $0xf8] sm:$0x7]  ;;  %v993_v45 = vld [vmem:[#allocation2 + $0x69] sm:$0x7] }
 0x10c   : > { %852 = vst [vmem:[#allocation2 + $0x100] sm:$0xff] %v780_v11  ;;  %v693_v63 = vpop.f32.mrf.mxu2  ;;  %v738_v49 = vpop.f32.mrf.mxu3  ;;  %v1980_v11 = vmax.f32 %v1061_v5, %v1015_v4  ;;  %v1004_v31 = vld [vmem:[#allocation2 + $0xf1] sm:$0xff] }
 0x10d   : > { %v694_v51 = vadd.f32 %v1665_v40, %v693_v63  ;;  %v739_v55 = vadd.f32 %v1665_v40, %v738_v49  ;;  %v605_v23 = vpop.f32.mrf.mxu0  ;;  %v650_v30 = vpop.f32.mrf.mxu1  ;;  %v1136_v39 = vmax.f32 %v1897_v12, %v1106_v10  ;;  %v992_v49 = vld [vmem:[#allocation2 + $0x61] sm:$0xff]  ;;  %v1005_v12 = vld [vmem:[#allocation2 + $0xf9] sm:$0x7] }
 0x10e   : > { %v1975_v48 = vadd.f32 %v1665_v40, %v605_v23  ;;  %v1978_v1 = vadd.f32 %v1665_v40, %v650_v30  ;;  %v1137_v63 = vmax.f32 %v1899_v22, %v1980_v11  ;;  %v1143_v23 = vmax.f32 %v1906_v62, %v1985_v21  ;;  %v1196_v30 = vld [vmem:[%s1838_s29 + $0xc] sm:$0x3] }
 0x10f   : > { %v798_v0 = vmax.f32 %v694_v51, 0.0  ;;  %v816_v26 = vmax.f32 %v739_v55, 0.0 }
 0x110   : > { %v763_v15 = vmax.f32 %v1975_v48, 0.0  ;;  %v781_v6 = vmax.f32 %v1978_v1, 0.0  ;;  %v925_v33 = vld [vmem:[#allocation2 + $0x188] sm:$0x7] }
 0x111   : > { %870 = vst [vmem:[#allocation2 + $0x190] sm:$0xff] %v798_v0  ;;  %v937_v41 = vld [vmem:[#allocation2 + $0x218] sm:$0x7] }
 0x112   : > { %v946_v27 = vld [vmem:[#allocation2 + $0x6c] sm:$0xff]  ;;  %v947_v28 = vld [vmem:[#allocation2 + $0x74] sm:$0x7]  ;;  %888 = vst [vmem:[#allocation2 + $0x220] sm:$0xff] %v816_v26  ;;  %v1029_v16 = vld [vmem:[#allocation2 + $0x219] sm:$0x7] }
 0x113   : > { %v1038_v60 = vmax.f32 %v760_v29, %v946_v27  ;;  %v1039_v52 = vmax.f32 %v901_v19, %v947_v28  ;;  %v958_v5 = vld [vmem:[#allocation2 + $0xfc] sm:$0xff]  ;;  %v959_v38 = vld [vmem:[#allocation2 + $0x104] sm:$0x7]  ;;  %835 = vst [vmem:[#allocation2 + $0x78] sm:$0xff] %v763_v15  ;;  %v1028_v0 = vld [vmem:[#allocation2 + $0x211] sm:$0xff] }
 0x114   : > { %v1050_v47 = vmax.f32 %v778_v18, %v958_v5  ;;  %v1051_v46 = vmax.f32 %v913_v54, %v959_v38  ;;  %853 = vst [vmem:[#allocation2 + $0x108] sm:$0xff] %v781_v6  ;;  %v695_v14 = vpop.f32.mrf.mxu2  ;;  %v740_v29 = vpop.f32.mrf.mxu3 }
 0x115   : > { %v2002_v51 = vmax.f32 %v1038_v60, %v992_v49  ;;  %v2004_v22 = vmax.f32 %v1039_v52, %v993_v45  ;;  %v2007_v55 = vadd.f32 %v1665_v40, %v695_v14  ;;  %v608_v24 = vpop.f32.mrf.mxu0  ;;  %v653_v18 = vpop.f32.mrf.mxu1  ;;  %v1543_v29 = vld [vmem:[%s2095_s2] ss:$0 sm:$0xff] }
 0x116   : > { %v2012_v57 = vmax.f32 %v1050_v47, %v1004_v31  ;;  %v2014_v32 = vmax.f32 %v1051_v46, %v1005_v12  ;;  %v609_v13 = vadd.f32 %v1665_v40, %v608_v24  ;;  %v654_v43 = vadd.f32 %v1665_v40, %v653_v18  ;;  %v1016_v40 = vld [vmem:[#allocation2 + $0x181] sm:$0xff]  ;;  %v1220_v18 = vld [vmem:[%s1838_s29 + $0x3c] sm:$0x3] }
 0x117   : > { %v1146_v58 = vmax.f32 %v1124_v20, %v2002_v51  ;;  %v1147_v4 = vmax.f32 %v1125_v53, %v2004_v22  ;;  %v799_v61 = vmax.f32 %v2007_v55, 0.0 }
 0x118   : > { %v1152_v62 = vmax.f32 %v1130_v36, %v2012_v57  ;;  %v1153_v26 = vmax.f32 %v1131_v37, %v2014_v32  ;;  %v970_v9 = vld [vmem:[#allocation2 + $0x18c] sm:$0xff]  ;;  %v971_v10 = vld [vmem:[#allocation2 + $0x194] sm:$0x7]  ;;  %v764_v11 = vmax.f32 %v609_v13, 0.0  ;;  %v1017_v36 = vld [vmem:[#allocation2 + $0x189] sm:$0x7] }
 0x119   : > { %v1168_v19 = vpack.c.bf16 %v1146_v58, %v1146_v58  ;;  %v1169_v21 = vpack.c.bf16 %v1147_v4, %v1147_v4  ;;  %v1062_v20 = vmax.f32 %v796_v3, %v970_v9  ;;  %v1063_v53 = vmax.f32 %v925_v33, %v971_v10  ;;  %v982_v27 = vld [vmem:[#allocation2 + $0x21c] sm:$0xff]  ;;  %v983_v28 = vld [vmem:[#allocation2 + $0x224] sm:$0x7]  ;;  %871 = vst [vmem:[#allocation2 + $0x198] sm:$0xff] %v799_v61  ;;  %v1232_v58 = vld [vmem:[%s1838_s29 + $0x54] sm:$0x3] }
 0x11a   : > { %v1174_v37 = vpack.c.bf16 %v1152_v62, %v1152_v62  ;;  %v1175_v54 = vpack.c.bf16 %v1153_v26, %v1153_v26  ;;  %v1074_v60 = vmax.f32 %v814_v44, %v982_v27  ;;  %v1075_v52 = vmax.f32 %v937_v41, %v983_v28  ;;  %836 = vst [vmem:[#allocation2 + $0x80] sm:$0xff] %v764_v11 }
 0x11b   : > { %1195 = vst [vmem:[%s1838_s29 + $0x8] sm:$0xf] %v1168_v19  ;;  %v1197_v7 = vsel %vm1874_vm5, %v1169_v21, %v1196_v30  ;;  %v2033_v3 = vmax.f32 %v1062_v20, %v1016_v40  ;;  %v2035_v5 = vmax.f32 %v1063_v53, %v1017_v36  ;;  %v782_v38 = vmax.f32 %v654_v43, 0.0 }
 0x11c   : > { %1198 = vst [vmem:[%s1838_s29 + $0xc] sm:$0x3] %v1197_v7  ;;  %v1209_v49 = vsel %vm1874_vm5, %v1175_v54, %v1208_v42  ;;  %v1120_v45 = vmax.f32 %v1074_v60, %v1028_v0  ;;  %v1121_v2 = vmax.f32 %v1075_v52, %v1029_v16  ;;  %v698_v44 = vpop.f32.mrf.mxu2  ;;  %v743_v47 = vpop.f32.mrf.mxu3 }
 0x11d   : > { %1207 = vst [vmem:[%s1838_s29 + $0x20] sm:$0xf] %v1174_v37  ;;  %v1158_v46 = vmax.f32 %v1136_v39, %v2033_v3  ;;  %v1159_v14 = vmax.f32 %v1137_v63, %v2035_v5  ;;  %v699_v31 = vadd.f32 %v1543_v29, %v698_v44  ;;  %v610_v12 = vpop.f32.mrf.mxu0  ;;  %v655_v24 = vpop.f32.mrf.mxu1 }
 0x11e   : > { %1210 = vst [vmem:[%s1838_s29 + $0x24] sm:$0x3] %v1209_v49  ;;  %v1164_v30 = vmax.f32 %v1142_v25, %v1120_v45  ;;  %v1165_v13 = vmax.f32 %v1143_v23, %v1121_v2  ;;  %v611_v33 = vadd.f32 %v1543_v29, %v610_v12  ;;  %v656_v63 = vadd.f32 %v1543_v29, %v655_v24 }
 0x11f   : > { %v1180_v41 = vpack.c.bf16 %v1158_v46, %v1158_v46  ;;  %v1181_v39 = vpack.c.bf16 %v1159_v14, %v1159_v14  ;;  %854 = vst [vmem:[#allocation2 + $0x110] sm:$0xff] %v782_v38  ;;  %v800_v0 = vmax.f32 %v699_v31, 0.0 }
 0x120   : > { %v1186_v4 = vpack.c.bf16 %v1164_v30, %v1164_v30  ;;  %v1187_v42 = vpack.c.bf16 %v1165_v13, %v1165_v13  ;;  %v765_v62 = vmax.f32 %v611_v33, 0.0  ;;  %v783_v23 = vmax.f32 %v656_v63, 0.0 }
 0x121   : > { %1219 = vst [vmem:[%s1838_s29 + $0x38] sm:$0xf] %v1180_v41  ;;  %v1221_v43 = vsel %vm1874_vm5, %v1181_v39, %v1220_v18  ;;  %v903_v16 = vld [vmem:[#allocation2 + $0x80] sm:$0x7]  ;;  %v1212_v41 = vld [vmem:[%s1838_s29 + $0x2c] sm:$0x3] }
 0x122   : > { %1222 = vst [vmem:[%s1838_s29 + $0x3c] sm:$0x3] %v1221_v43  ;;  %v1233_v25 = vsel %vm1874_vm5, %v1187_v42, %v1232_v58  ;;  %v994_v19 = vld [vmem:[#allocation2 + $0x79] sm:$0xff]  ;;  %v995_v37 = vld [vmem:[#allocation2 + $0x81] sm:$0x7] }
 0x123   : > { %1231 = vst [vmem:[%s1838_s29 + $0x50] sm:$0xf] %v1186_v4 }
 0x124   : > { %1234 = vst [vmem:[%s1838_s29 + $0x54] sm:$0x3] %v1233_v25  ;;  %v700_v26 = vpop.f32.mrf.mxu2  ;;  %v745_v9 = vpop.f32.mrf.mxu3 }
 0x125   : > { %872 = vst [vmem:[#allocation2 + $0x1a0] sm:$0xff] %v800_v0  ;;  %v701_v10 = vadd.f32 %v1543_v29, %v700_v26 }
 0x126   : > { %837 = vst [vmem:[#allocation2 + $0x88] sm:$0xff] %v765_v62  ;;  %v915_v53 = vld [vmem:[#allocation2 + $0x110] sm:$0x7] }
 0x127   : > { %855 = vst [vmem:[#allocation2 + $0x118] sm:$0xff] %v783_v23  ;;  %v801_v11 = vmax.f32 %v701_v10, 0.0  ;;  %v1006_v54 = vld [vmem:[#allocation2 + $0x109] sm:$0xff]  ;;  %v1007_v60 = vld [vmem:[#allocation2 + $0x111] sm:$0x7] }
 0x129   : > { %873 = vst [vmem:[#allocation2 + $0x1a8] sm:$0xff] %v801_v11 }
 0x12c   : > { %v927_v38 = vld [vmem:[#allocation2 + $0x1a0] sm:$0x7] }
 0x12d   : > { %v948_v21 = vld [vmem:[#allocation2 + $0x84] sm:$0xff]  ;;  %v949_v20 = vld [vmem:[#allocation2 + $0x8c] sm:$0x7]  ;;  %v1018_v14 = vld [vmem:[#allocation2 + $0x199] sm:$0xff] }
 0x12e   : > { %v1040_v27 = vmax.f32 %v763_v15, %v948_v21  ;;  %v1041_v28 = vmax.f32 %v903_v16, %v949_v20  ;;  %v960_v40 = vld [vmem:[#allocation2 + $0x114] sm:$0xff]  ;;  %v961_v36 = vld [vmem:[#allocation2 + $0x11c] sm:$0x7]  ;;  %v1019_v29 = vld [vmem:[#allocation2 + $0x1a1] sm:$0x7] }
 0x12f   : > { %v1052_v52 = vmax.f32 %v781_v6, %v960_v40  ;;  %v1053_v7 = vmax.f32 %v915_v53, %v961_v36 }
 0x130   : > { %v1086_v49 = vmax.f32 %v1040_v27, %v994_v19  ;;  %v1087_v45 = vmax.f32 %v1041_v28, %v995_v37  ;;  %v972_v2 = vld [vmem:[#allocation2 + $0x1a4] sm:$0xff]  ;;  %v973_v44 = vld [vmem:[#allocation2 + $0x1ac] sm:$0x7] }
 0x131   : > { %v1098_v47 = vmax.f32 %v1052_v52, %v1006_v54  ;;  %v1099_v46 = vmax.f32 %v1053_v7, %v1007_v60  ;;  %v1064_v48 = vmax.f32 %v799_v61, %v972_v2  ;;  %v1065_v15 = vmax.f32 %v927_v38, %v973_v44  ;;  %v1200_v61 = vld [vmem:[%s1838_s29 + $0x14] sm:$0x3] }
 0x132   : > { %v1126_v31 = vmax.f32 %v2002_v51, %v1086_v49  ;;  %v1127_v1 = vmax.f32 %v2004_v22, %v1087_v45 }
 0x133   : > { %v1132_v6 = vmax.f32 %v2012_v57, %v1098_v47  ;;  %v1133_v12 = vmax.f32 %v2014_v32, %v1099_v46  ;;  %v1110_v24 = vmax.f32 %v1064_v48, %v1018_v14  ;;  %v1111_v18 = vmax.f32 %v1065_v15, %v1019_v29 }
 0x134   : > { %v1148_v30 = vmax.f32 %v1126_v31, %v1789_v59  ;;  %v1149_v55 = vmax.f32 %v1127_v1, %v1793_v17 }
 0x135   : > { %v1154_v13 = vmax.f32 %v1132_v6, %v1799_v34  ;;  %v1155_v51 = vmax.f32 %v1133_v12, %v1801_v35  ;;  %v1138_v22 = vmax.f32 %v2033_v3, %v1110_v24  ;;  %v1139_v57 = vmax.f32 %v2035_v5, %v1111_v18  ;;  %v1224_v35 = vld [vmem:[%s1838_s29 + $0x44] sm:$0x3] }
 0x136   : > { %v1170_v32 = vpack.c.bf16 %v1148_v30, %v1148_v30  ;;  %v1171_v33 = vpack.c.bf16 %v1149_v55, %v1149_v55 }
 0x137   : > { %v1176_v59 = vpack.c.bf16 %v1154_v13, %v1154_v13  ;;  %v1177_v39 = vpack.c.bf16 %v1155_v51, %v1155_v51  ;;  %v1160_v17 = vmax.f32 %v1138_v22, %v1820_v50  ;;  %v1161_v58 = vmax.f32 %v1139_v57, %v1825_v8 }
 0x138   : > { %1199 = vst [vmem:[%s1838_s29 + $0x10] sm:$0xf] %v1170_v32  ;;  %v1201_v34 = vsel %vm1874_vm5, %v1171_v33, %v1200_v61 }
 0x139   : > { %1202 = vst [vmem:[%s1838_s29 + $0x14] sm:$0x3] %v1201_v34  ;;  %v1213_v3 = vsel %vm1874_vm5, %v1177_v39, %v1212_v41  ;;  %v1182_v5 = vpack.c.bf16 %v1160_v17, %v1160_v17  ;;  %v1183_v63 = vpack.c.bf16 %v1161_v58, %v1161_v58 }
 0x13a   : > { %1211 = vst [vmem:[%s1838_s29 + $0x28] sm:$0xf] %v1176_v59 }
 0x13b   : > { %1214 = vst [vmem:[%s1838_s29 + $0x2c] sm:$0x3] %v1213_v3  ;;  %v1225_v4 = vsel %vm1874_vm5, %v1183_v63, %v1224_v35 }
 0x13c   : > { %1223 = vst [vmem:[%s1838_s29 + $0x40] sm:$0xf] %v1182_v5 }
 0x13d   : > { %1226 = vst [vmem:[%s1838_s29 + $0x44] sm:$0x3] %v1225_v4 }
 0x13e PF: > { %s13_s12 = sadd.s32 1, %s1550_s12  }
 0x13f   : > { %p10_p4 = scmp.ge.s32.totalorder %s13_s12, 4  }
 0x141   :  { %12 = sbr.rel (!%p10_p4) target bundleno = 1 (0x1), region = 62 }

// kernel: mnist_net_forward.4
= control target key start
LH: loop header
LB: loop body
LE: loop exit
PB: predicated region body
PF: predicated region fallthrough
CT: control target
= control target key end

     0   :  { %s1067_s12 = smov 0   ;;  %s1258_s0 = inlined_call_operand.vmem [shape: bf16[2,64,500], index: 0, kind: input, shape index: {}]   ;;  %s1259_s1 = inlined_call_operand.vmem [shape: bf16[500,128], index: 1, kind: input, shape index: {}]   ;;  %s1260_s2 = inlined_call_operand.vmem [shape: f32[1,128], index: 2, kind: input, shape index: {}]   ;;  %s1261_s3 = inlined_call_operand.vmem [shape: bf16[2,3,3,128], index: 3, kind: output, shape index: {}]  }
   0x1 LB: > { %s779_s13 = sadd.s32 4294967295, %s1045_s12   ;;  %p783_p0 = scmp.ge.s32.totalorder %s1045_s12, 1  ;;  %s1045_s12 = sphi %s1067_s12, %s13_s12  }
   0x2   : > { %p137_p1 = scmp.lt.s32.totalorder %s1045_s12, 3 }
   0x4   : > { %p138_p2 = pnand %p783_p0, %p137_p1 }
   0x5   : > { %p161_p3 = scmp.lt.s32.totalorder (!%p138_p2), %s779_s13, 1 }
   0x6   : > { %141 = sbr.rel (%p138_p2) target bundleno = 253 (0xfd), region = 32 }
   0xb   : > { %v1005_v0 = vld [vmem:[%s1259_s1 + $0x38] sm:$0xff]  ;;  %v1004_v5 = vld [vmem:[%s1259_s1 + $0x30] sm:$0xff]  ;;  %vm532_vm0 = vcmask 1041408   ;;  %v1003_v10 = vld [vmem:[%s1259_s1 + $0x28] sm:$0xff]  ;;  %s1265_s13 = smov (!%p161_p3, %s779_s13), 1  ;;  %vm519_vm1 = vcmask 949248  }
   0xc   : > { %v1013_v1 = vld [vmem:[%s1259_s1 + $0x78] sm:$0xff]  ;;  %536 = vmatpush.bf16.msra.mxu0 %v1005_v0  ;;  %v1012_v6 = vld [vmem:[%s1259_s1 + $0x70] sm:$0xff]  ;;  %v1011_v11 = vld [vmem:[%s1259_s1 + $0x68] sm:$0xff]  ;;  %s981_s8 = sshll.u32 %s1265_s13, 7  ;;  %s1029_s7 = smul.u32 6, %s1265_s13 }
   0xd   : > { %v1021_v2 = vld [vmem:[%s1259_s1 + $0xb8] sm:$0xff]  ;;  %565 = vmatpush.bf16.msra.mxu1 %v1013_v1  ;;  %v1020_v7 = vld [vmem:[%s1259_s1 + $0xb0] sm:$0xff]  ;;  %v1019_v13 = vld [vmem:[%s1259_s1 + $0xa8] sm:$0xff]  ;;  %s1161_s17 = scalar_lea.vmem %s1258_s0, %s981_s8  ;;  %vm713_vm2 = vsmask.f32 1280 }
   0xe   : > { %v249_v3 = vld [vmem:[%s1259_s1 + $0xf8] sm:$0x3]  ;;  %594 = vmatpush.bf16.msra.mxu2 %v1021_v2  ;;  %v1028_v12 = vld [vmem:[%s1259_s1 + $0xf0] sm:$0xff]  ;;  %v1002_v14 = vld [vmem:[%s1259_s1 + $0x20] sm:$0xff]  ;;  %s1234_s10 = scalar_lea.vmem %s1261_s3, %s1029_s7 }
   0xf   : > { %v455_v4 = vunpack.c.l.b16 %v249_v3  ;;  %v1010_v15 = vld [vmem:[%s1259_s1 + $0x60] sm:$0xff]  ;;  %v1027_v16 = vld [vmem:[%s1259_s1 + $0xe8] sm:$0xff]  ;;  %v1001_v18 = vld [vmem:[%s1259_s1 + $0x18] sm:$0xff] }
  0x10   : > { %537 = vmatpush.bf16.msra.mxu0 %v1004_v5  ;;  %v1018_v17 = vld [vmem:[%s1259_s1 + $0xa0] sm:$0xff]  ;;  %v1009_v19 = vld [vmem:[%s1259_s1 + $0x58] sm:$0xff]  ;;  %v1000_v22 = vld [vmem:[%s1259_s1 + $0x10] sm:$0xff] }
  0x11   : > { %v487_v8 = vpack.c.b16 %v455_v4, %v455_v4  ;;  %566 = vmatpush.bf16.msra.mxu1 %v1012_v6  ;;  %v1026_v20 = vld [vmem:[%s1259_s1 + $0xe0] sm:$0xff]  ;;  %v1017_v21 = vld [vmem:[%s1259_s1 + $0x98] sm:$0xff]  ;;  %v1008_v23 = vld [vmem:[%s1259_s1 + $0x50] sm:$0xff] }
  0x12   : > { %595 = vmatpush.bf16.msra.mxu2 %v1020_v7  ;;  %v1025_v24 = vld [vmem:[%s1259_s1 + $0xd8] sm:$0xff]  ;;  %v1016_v25 = vld [vmem:[%s1259_s1 + $0x90] sm:$0xff]  ;;  %v999_v26 = vld [vmem:[%s1259_s1 + $0x8] sm:$0xff] }
  0x13   : > { %v534_v9 = vsel %vm532_vm0, %v487_v8, 0  ;;  %v1007_v27 = vld [vmem:[%s1259_s1 + $0x48] sm:$0xff]  ;;  %v1024_v28 = vld [vmem:[%s1259_s1 + $0xd0] sm:$0xff]  ;;  %v998_v31 = vld [vmem:[%s1259_s1] sm:$0xff] }
  0x14   : > { %623 = vmatpush.bf16.msra.mxu3 %v534_v9  ;;  %538 = vmatpush.bf16.msra.mxu0 %v1003_v10  ;;  %v1015_v29 = vld [vmem:[%s1259_s1 + $0x88] sm:$0xff]  ;;  %v1006_v32 = vld [vmem:[%s1259_s1 + $0x40] sm:$0xff]  ;;  %v984_v34 = vld [vmem:[%s1161_s17 + $0xc] sm:$0xf0] }
  0x15   : > { %567 = vmatpush.bf16.msra.mxu1 %v1011_v11  ;;  %v1023_v30 = vld [vmem:[%s1259_s1 + $0xc8] sm:$0xff]  ;;  %v789_v33 = vld [vmem:[%s1161_s17] sm:$0xf]  ;;  %v982_v35 = vld [vmem:[%s1161_s17 + $0x4] sm:$0xf] }
  0x16   : > { %596 = vmatpush.bf16.msra.mxu2 %v1019_v13  ;;  %v791_v36 = vld [vmem:[%s1161_s17 + $0x10] sm:$0xf0]  ;;  %v1014_v37 = vld [vmem:[%s1259_s1 + $0x80] sm:$0xff]  ;;  %v797_v38 = vld [vmem:[%s1161_s17 + $0x8] sm:$0xf]  ;;  %v790_v40 = vor.u32 %v984_v34, %v789_v33 }
  0x17   : > { %v985_v39 = vld [vmem:[%s1161_s17 + $0x14] sm:$0xf0]  ;;  %v794_v41 = vor.u32 %v982_v35, %v791_v36  ;;  %v1022_v43 = vld [vmem:[%s1259_s1 + $0xc0] sm:$0xff]  ;;  %v983_v44 = vld [vmem:[%s1161_s17 + $0xc] sm:$0xf] }
  0x18   : > { %624 = vmatpush.bf16.msra.mxu3 %v1028_v12  ;;  %539 = vmatpush.bf16.msra.mxu0 %v1002_v14  ;;  %v798_v42 = vor.u32 %v985_v39, %v797_v38  ;;  %v799_v45 = vld [vmem:[%s1161_s17 + $0x18] sm:$0xf0]  ;;  %v805_v47 = vld [vmem:[%s1161_s17 + $0x20] sm:$0xf]  ;;  %v988_v48 = vld [vmem:[%s1161_s17 + $0x2c] sm:$0xf0] }
  0x19   : > { %568 = vmatpush.bf16.msra.mxu1 %v1010_v15  ;;  %v802_v46 = vor.u32 %v983_v44, %v799_v45  ;;  %v986_v49 = vld [vmem:[%s1161_s17 + $0x24] sm:$0xf]  ;;  %v807_v50 = vld [vmem:[%s1161_s17 + $0x30] sm:$0xf0]  ;;  %v813_v51 = vld [vmem:[%s1161_s17 + $0x28] sm:$0xf]  ;;  %v806_v53 = vor.u32 %v988_v48, %v805_v47 }
  0x1a   : > { %597 = vmatpush.bf16.msra.mxu2 %v1018_v17  ;;  %v989_v52 = vld [vmem:[%s1161_s17 + $0x34] sm:$0xf0]  ;;  %v810_v54 = vor.u32 %v986_v49, %v807_v50  ;;  %v987_v56 = vld [vmem:[%s1161_s17 + $0x2c] sm:$0xf]  ;;  %v815_v57 = vld [vmem:[%s1161_s17 + $0x38] sm:$0xf0] }
  0x1b   : > { %v814_v55 = vor.u32 %v989_v52, %v813_v51  ;;  %v818_v58 = vor.u32 %v987_v56, %v815_v57  ;;  %v821_v59 = vld [vmem:[%s1161_s17 + $0x40] sm:$0xf]  ;;  %v992_v60 = vld [vmem:[%s1161_s17 + $0x4c] sm:$0xf0]  ;;  %v990_v61 = vld [vmem:[%s1161_s17 + $0x44] sm:$0xf] }
  0x1c   : > { %625 = vmatpush.bf16.msra.mxu3 %v1027_v16  ;;  %540 = vmatpush.bf16.msra.mxu0 %v1001_v18  ;;  %v823_v62 = vld [vmem:[%s1161_s17 + $0x50] sm:$0xf0]  ;;  %v829_v63 = vld [vmem:[%s1161_s17 + $0x48] sm:$0xf]  ;;  %v993_v0 = vld [vmem:[%s1161_s17 + $0x54] sm:$0xf0]  ;;  %v822_v1 = vor.u32 %v992_v60, %v821_v59 }
  0x1d   : > { %569 = vmatpush.bf16.msra.mxu1 %v1009_v19  ;;  %v826_v2 = vor.u32 %v990_v61, %v823_v62  ;;  %v830_v3 = vor.u32 %v993_v0, %v829_v63  ;;  %v991_v4 = vld [vmem:[%s1161_s17 + $0x4c] sm:$0xf]  ;;  %v831_v5 = vld [vmem:[%s1161_s17 + $0x58] sm:$0xf0]  ;;  %v837_v7 = vld [vmem:[%s1161_s17 + $0x60] sm:$0xf] }
  0x1e   : > { %598 = vmatpush.bf16.msra.mxu2 %v1017_v21  ;;  %v834_v6 = vor.u32 %v991_v4, %v831_v5  ;;  %v996_v8 = vld [vmem:[%s1161_s17 + $0x6c] sm:$0xf0]  ;;  %v994_v9 = vld [vmem:[%s1161_s17 + $0x64] sm:$0xf]  ;;  %v839_v10 = vld [vmem:[%s1161_s17 + $0x70] sm:$0xf0] }
  0x1f   : > { %v845_v11 = vld [vmem:[%s1161_s17 + $0x68] sm:$0xf]  ;;  %v997_v12 = vld [vmem:[%s1161_s17 + $0x74] sm:$0xf0]  ;;  %v838_v13 = vor.u32 %v996_v8, %v837_v7  ;;  %v842_v14 = vor.u32 %v994_v9, %v839_v10  ;;  %v995_v16 = vld [vmem:[%s1161_s17 + $0x6c] sm:$0xf] }
  0x20   : > { %626 = vmatpush.bf16.msra.mxu3 %v1026_v20  ;;  %541 = vmatpush.bf16.msra.mxu0 %v1000_v22  ;;  %v846_v15 = vor.u32 %v997_v12, %v845_v11  ;;  %v847_v17 = vld [vmem:[%s1161_s17 + $0x78] sm:$0xf0]  ;;  %v1223_v19 = vld [vmem:[%s1260_s2] ss:$0 sm:$0xff]  ;;  %vm1238_vm3 = vmand %vm532_vm0, %vm713_vm2 }
  0x21   : > { %570 = vmatpush.bf16.msra.mxu1 %v1008_v23  ;;  %v850_v18 = vor.u32 %v995_v16, %v847_v17 }
  0x22   : > { %599 = vmatpush.bf16.msra.mxu2 %v1016_v25 }
  0x24   : > { %627 = vmatpush.bf16.msra.mxu3 %v1025_v24  ;;  %542 = vmatpush.bf16.msra.mxu0 %v999_v26 }
  0x25   : > { %571 = vmatpush.bf16.msra.mxu1 %v1007_v27 }
  0x26   : > { %600 = vmatpush.bf16.msra.mxu2 %v1015_v29 }
  0x28   : > { %628 = vmatpush.bf16.msra.mxu3 %v1024_v28  ;;  %543 = vmatpush.bf16.msra.mxu0 %v998_v31 }
  0x29   : > { %572 = vmatpush.bf16.msra.mxu1 %v1006_v32 }
  0x2a   : > { %601 = vmatpush.bf16.msra.mxu2 %v1014_v37 }
  0x2b   : > { %544 = vmatmul.bf16.vlgmr.msra.gmra.mxu0 %v790_v40 }
  0x2c   : > { %629 = vmatpush.bf16.msra.mxu3 %v1023_v30  ;;  %573 = vmatmul.bf16.vlgmr.msra.gmra.mxu1 %v794_v41 }
  0x2d   : > { %602 = vmatmul.bf16.vlgmr.msra.gmra.mxu2 %v798_v42 }
  0x30   : > { %630 = vmatpush.bf16.msra.mxu3 %v1022_v43 }
  0x33   : > { %975 = vmatmul.msk.bf16.vlgmr.msra.gmra.mxu3 %vm519_vm1, %v802_v46 }
  0x3b   : > { %549 = vmatmul.bf16.gmra.mxu0 %v806_v53 }
  0x3c   : > { %578 = vmatmul.bf16.gmra.mxu1 %v810_v54 }
  0x3d   : > { %607 = vmatmul.bf16.gmra.mxu2 %v814_v55 }
  0x43   : > { %976 = vmatmul.msk.bf16.gmra.mxu3 %vm519_vm1, %v818_v58 }
  0x4b   : > { %554 = vmatmul.bf16.gmra.mxu0 %v822_v1 }
  0x4c   : > { %583 = vmatmul.bf16.gmra.mxu1 %v826_v2 }
  0x4d   : > { %612 = vmatmul.bf16.gmra.mxu2 %v830_v3 }
  0x53   : > { %977 = vmatmul.msk.bf16.gmra.mxu3 %vm519_vm1, %v834_v6 }
  0x5b   : > { %559 = vmatmul.bf16.gmra.mxu0 %v838_v13 }
  0x5c   : > { %588 = vmatmul.bf16.gmra.mxu1 %v842_v14 }
  0x5d   : > { %617 = vmatmul.bf16.gmra.mxu2 %v846_v15 }
  0x63   : > { %978 = vmatmul.msk.bf16.gmra.mxu3 %vm519_vm1, %v850_v18 }
  0xa8   : > { %v545_v20 = vpop.f32.mrf.mxu0 }
  0xa9   : > { %v574_v21 = vpop.f32.mrf.mxu1  ;;  %v546_v22 = vadd.f32 %v1223_v19, %v545_v20 }
  0xab   : > { %v575_v23 = vadd.f32 %v574_v21, %v546_v22  ;;  %v715_v22 = vld [vmem:[%s1234_s10] sm:$0x3] }
  0xb0   : > { %v603_v24 = vpop.f32.mrf.mxu2  ;;  %v547_v26 = vpop.f32.mrf.mxu0 }
  0xb1   : > { %v604_v25 = vadd.f32 %v603_v24, %v575_v23  ;;  %v576_v27 = vpop.f32.mrf.mxu1  ;;  %v548_v29 = vadd.f32 %v1223_v19, %v547_v26 }
  0xb3   : > { %v577_v33 = vadd.f32 %v576_v27, %v548_v29 }
  0xb6   : > { %v632_v28 = vpop.f32.mrf.mxu3 }
  0xb7   : > { %v633_v30 = vadd.f32 %v632_v28, %v604_v25 }
  0xb8   : > { %v605_v32 = vpop.f32.mrf.mxu2  ;;  %v550_v34 = vpop.f32.mrf.mxu0 }
  0xb9   : > { %v652_v31 = vmax.f32 %v633_v30, 0.0  ;;  %v579_v35 = vpop.f32.mrf.mxu1  ;;  %v551_v36 = vadd.f32 %v1223_v19, %v550_v34  ;;  %v606_v37 = vadd.f32 %v605_v32, %v577_v33 }
  0xbb   : > { %660 = vst [vmem:[#allocation2] sm:$0xff] %v652_v31  ;;  %v580_v39 = vadd.f32 %v579_v35, %v551_v36 }
  0xbe   : > { %v634_v38 = vpop.f32.mrf.mxu3 }
  0xbf   : > { %v635_v40 = vadd.f32 %v634_v38, %v606_v37 }
  0xc0   : > { %v608_v42 = vpop.f32.mrf.mxu2  ;;  %v552_v44 = vpop.f32.mrf.mxu0 }
  0xc1   : > { %v653_v41 = vmax.f32 %v635_v40, 0.0  ;;  %v609_v43 = vadd.f32 %v608_v42, %v580_v39  ;;  %v581_v45 = vpop.f32.mrf.mxu1  ;;  %v553_v47 = vadd.f32 %v1223_v19, %v552_v44 }
  0xc2   : > { %v668_v56 = vld [vmem:[#allocation2] sm:$0x7]  ;;  %v675_v57 = vld [vmem:[#allocation2 + $0x4] sm:$0x7] }
  0xc3   : > { %661 = vst [vmem:[#allocation2 + $0x8] sm:$0xff] %v653_v41  ;;  %v582_v53 = vadd.f32 %v581_v45, %v553_v47  ;;  %v689_v62 = vmax.f32 %v668_v56, %v675_v57  ;;  %v682_v4 = vld [vmem:[#allocation2 + $0x1] sm:$0x7] }
  0xc5   : > { %v696_v8 = vmax.f32 %v689_v62, %v682_v4 }
  0xc6   : > { %v637_v46 = vpop.f32.mrf.mxu3 }
  0xc7   : > { %v638_v48 = vadd.f32 %v637_v46, %v609_v43 }
  0xc8   : > { %v610_v52 = vpop.f32.mrf.mxu2  ;;  %v555_v54 = vpop.f32.mrf.mxu0 }
  0xc9   : > { %v654_v49 = vmax.f32 %v638_v48, 0.0  ;;  %v584_v55 = vpop.f32.mrf.mxu1  ;;  %v556_v58 = vadd.f32 %v1223_v19, %v555_v54  ;;  %v611_v60 = vadd.f32 %v610_v52, %v582_v53  ;;  %v718_v52 = vld [vmem:[%s1234_s10 + $0x2] sm:$0x3] }
  0xca   : > { %v669_v50 = vld [vmem:[#allocation2 + $0x8] sm:$0x7]  ;;  %v676_v51 = vld [vmem:[#allocation2 + $0xc] sm:$0x7] }
  0xcb   : > { %662 = vst [vmem:[#allocation2 + $0x10] sm:$0xff] %v654_v49  ;;  %v690_v59 = vmax.f32 %v669_v50, %v676_v51  ;;  %v585_v63 = vadd.f32 %v584_v55, %v556_v58  ;;  %v683_v1 = vld [vmem:[#allocation2 + $0x9] sm:$0x7] }
  0xcd   : > { %v697_v2 = vmax.f32 %v690_v59, %v683_v1 }
  0xce   : > { %v639_v61 = vpop.f32.mrf.mxu3 }
  0xcf   : > { %v640_v0 = vadd.f32 %v639_v61, %v611_v60  ;;  %v703_v14 = vmax.f32 %v696_v8, %v697_v2 }
  0xd0   : > { %v613_v7 = vpop.f32.mrf.mxu2  ;;  %v557_v11 = vpop.f32.mrf.mxu0 }
  0xd1   : > { %v655_v3 = vmax.f32 %v640_v0, 0.0  ;;  %v614_v10 = vadd.f32 %v613_v7, %v585_v63  ;;  %v586_v13 = vpop.f32.mrf.mxu1  ;;  %v558_v18 = vadd.f32 %v1223_v19, %v557_v11  ;;  %v721_v7 = vld [vmem:[%s1234_s10 + $0x4] sm:$0x3] }
  0xd2   : > { %v670_v5 = vld [vmem:[#allocation2 + $0x10] sm:$0x7]  ;;  %v677_v6 = vld [vmem:[#allocation2 + $0x14] sm:$0x7] }
  0xd3   : > { %v691_v9 = vmax.f32 %v670_v5, %v677_v6  ;;  %663 = vst [vmem:[#allocation2 + $0x18] sm:$0xff] %v655_v3  ;;  %v684_v12 = vld [vmem:[#allocation2 + $0x11] sm:$0x7]  ;;  %v587_v29 = vadd.f32 %v586_v13, %v558_v18 }
  0xd5   : > { %v698_v15 = vmax.f32 %v691_v9, %v684_v12 }
  0xd6   : > { %v642_v16 = vpop.f32.mrf.mxu3 }
  0xd7   : > { %v706_v17 = vmax.f32 %v703_v14, %v698_v15  ;;  %v643_v20 = vadd.f32 %v642_v16, %v614_v10 }
  0xd8   : > { %v615_v27 = vpop.f32.mrf.mxu2  ;;  %v560_v30 = vpop.f32.mrf.mxu0 }
  0xd9   : > { %v709_v23 = vpack.c.bf16 %v706_v17, %v706_v17  ;;  %v656_v24 = vmax.f32 %v643_v20, 0.0  ;;  %v561_v31 = vadd.f32 %v1223_v19, %v560_v30  ;;  %v616_v33 = vadd.f32 %v615_v27, %v587_v29  ;;  %v589_v34 = vpop.f32.mrf.mxu1 }
  0xda   : > { %v671_v25 = vld [vmem:[#allocation2 + $0x18] sm:$0x7]  ;;  %v678_v26 = vld [vmem:[#allocation2 + $0x1c] sm:$0x7] }
  0xdb   : > { %v716_v28 = vsel %vm1238_vm3, %v709_v23, %v715_v22  ;;  %664 = vst [vmem:[#allocation2 + $0x20] sm:$0xff] %v656_v24  ;;  %v692_v32 = vmax.f32 %v671_v25, %v678_v26  ;;  %v590_v36 = vadd.f32 %v589_v34, %v561_v31  ;;  %v685_v38 = vld [vmem:[#allocation2 + $0x19] sm:$0x7] }
  0xdc   : > { %717 = vst [vmem:[%s1234_s10] sm:$0x3] %v716_v28 }
  0xdd   : > { %v699_v39 = vmax.f32 %v692_v32, %v685_v38 }
  0xde   : > { %v644_v35 = vpop.f32.mrf.mxu3 }
  0xdf   : > { %v645_v37 = vadd.f32 %v644_v35, %v616_v33  ;;  %v704_v19 = vmax.f32 %v698_v15, %v699_v39 }
  0xe0   : > { %v618_v43 = vpop.f32.mrf.mxu2  ;;  %v562_v47 = vpop.f32.mrf.mxu0 }
  0xe1   : > { %v657_v40 = vmax.f32 %v645_v37, 0.0  ;;  %v619_v45 = vadd.f32 %v618_v43, %v590_v36  ;;  %v591_v57 = vpop.f32.mrf.mxu1 }
  0xe2   : > { %v672_v41 = vld [vmem:[#allocation2 + $0x20] sm:$0x7]  ;;  %v679_v42 = vld [vmem:[#allocation2 + $0x24] sm:$0x7] }
  0xe3   : > { %v693_v44 = vmax.f32 %v672_v41, %v679_v42  ;;  %665 = vst [vmem:[#allocation2 + $0x28] sm:$0xff] %v657_v40  ;;  %v686_v46 = vld [vmem:[#allocation2 + $0x21] sm:$0x7] }
  0xe5   : > { %v700_v48 = vmax.f32 %v693_v44, %v686_v46 }
  0xe6   : > { %v647_v49 = vpop.f32.mrf.mxu3 }
  0xe7   : > { %v707_v50 = vmax.f32 %v704_v19, %v700_v48  ;;  %v648_v51 = vadd.f32 %v647_v49, %v619_v45 }
  0xe8   : > { %v620_v58 = vpop.f32.mrf.mxu2 }
  0xe9   : > { %v710_v53 = vpack.c.bf16 %v707_v50, %v707_v50  ;;  %v658_v54 = vmax.f32 %v648_v51, 0.0 }
  0xea   : > { %v673_v55 = vld [vmem:[#allocation2 + $0x28] sm:$0x7]  ;;  %v680_v56 = vld [vmem:[#allocation2 + $0x2c] sm:$0x7] }
  0xeb   : > { %v719_v59 = vsel %vm1238_vm3, %v710_v53, %v718_v52  ;;  %666 = vst [vmem:[#allocation2 + $0x30] sm:$0xff] %v658_v54  ;;  %v694_v60 = vmax.f32 %v673_v55, %v680_v56  ;;  %v687_v62 = vld [vmem:[#allocation2 + $0x29] sm:$0x7] }
  0xec   : > { %720 = vst [vmem:[%s1234_s10 + $0x2] sm:$0x3] %v719_v59 }
  0xed   : > { %v701_v63 = vmax.f32 %v694_v60, %v687_v62 }
  0xee   : > { %v649_v61 = vpop.f32.mrf.mxu3 }
  0xef   : > { %v705_v4 = vmax.f32 %v700_v48, %v701_v63 }
  0xf2   : > { %v674_v0 = vld [vmem:[#allocation2 + $0x30] sm:$0x7]  ;;  %v681_v1 = vld [vmem:[#allocation2 + $0x34] sm:$0x7] }
  0xf3   : > { %v695_v2 = vmax.f32 %v674_v0, %v681_v1  ;;  %v688_v3 = vld [vmem:[#allocation2 + $0x31] sm:$0x7] }
  0xf5   : > { %v702_v5 = vmax.f32 %v695_v2, %v688_v3 }
  0xf7   : > { %v708_v6 = vmax.f32 %v705_v4, %v702_v5 }
  0xf9   : > { %v711_v8 = vpack.c.bf16 %v708_v6, %v708_v6 }
  0xfb   : > { %v722_v9 = vsel %vm1238_vm3, %v711_v8, %v721_v7 }
  0xfc   : > { %723 = vst [vmem:[%s1234_s10 + $0x4] sm:$0x3] %v722_v9 }
  0xfd PF: > { %s13_s12 = sadd.s32 1, %s1045_s12  }
  0xfe   : > { %p10_p4 = scmp.ge.s32.totalorder %s13_s12, 4  }
 0x100   :  { %12 = sbr.rel (!%p10_p4) target bundleno = 1 (0x1), region = 62 }

// kernel: mnist_net_forward.5
= control target key start
LH: loop header
LB: loop body
LE: loop exit
PB: predicated region body
PF: predicated region fallthrough
CT: control target
= control target key end

     0   :  { %vm713_vm0 = vcmask 1040384   ;;  %vm710_vm1 = vcmask 539648   ;;  %s2880_s0 = inlined_call_operand.vmem [shape: bf16[2,450], index: 0, kind: input, shape index: {}]   ;;  %s2881_s1 = inlined_call_operand.vmem [shape: bf16[450,512], index: 1, kind: input, shape index: {}]   ;;  %s2882_s2 = inlined_call_operand.vmem [shape: bf16[512,128], index: 2, kind: input, shape index: {}]   ;;  %s2883_s3 = inlined_call_operand.hbm [shape: f32[2,128], index: 3, kind: output, shape index: {}]  }
   0x1   :  { %v1398_v0 = vld [vmem:[%s2881_s1 + $0xe0] sm:$0xf]  ;;  %v1894_v1 = vld [vmem:[%s2881_s1 + $0xec] sm:$0xf0] }
   0x2   :  { %v1526_v2 = vld [vmem:[%s2881_s1 + $0x1e0] sm:$0xf]  ;;  %v1399_v3 = vor.u32 %v1894_v1, %v1398_v0  ;;  %v1926_v4 = vld [vmem:[%s2881_s1 + $0x1ec] sm:$0xf0] }
   0x3   :  { %v1654_v5 = vld [vmem:[%s2881_s1 + $0x2e0] sm:$0xf]  ;;  %v1958_v6 = vld [vmem:[%s2881_s1 + $0x2ec] sm:$0xf0]  ;;  %v1527_v7 = vor.u32 %v1926_v4, %v1526_v2  ;;  %v1892_v2 = vld [vmem:[%s2881_s1 + $0xe4] sm:$0xf] }
   0x4   :  { %v1655_v8 = vor.u32 %v1958_v6, %v1654_v5  ;;  %v2081_v9 = vld [vmem:[%s2881_s1 + $0x380] sm:$0x11]  ;;  %726 = vmatpush.bf16.msra.mxu0 %v1399_v3  ;;  %v1890_v12 = vld [vmem:[%s2881_s1 + $0xcc] sm:$0xf0]  ;;  %v1400_v3 = vld [vmem:[%s2881_s1 + $0xf0] sm:$0xf0] }
   0x5   :  { %v1382_v10 = vld [vmem:[%s2881_s1 + $0xc0] sm:$0xf]  ;;  %v478_v11 = vunpack.c.l.b16 %v2081_v9  ;;  %v1922_v14 = vld [vmem:[%s2881_s1 + $0x1cc] sm:$0xf0]  ;;  %739 = vmatpush.bf16.msra.mxu1 %v1527_v7 }
   0x6   :  { %v1510_v13 = vld [vmem:[%s2881_s1 + $0x1c0] sm:$0xf]  ;;  %752 = vmatpush.bf16.msra.mxu2 %v1655_v8  ;;  %v1383_v15 = vor.u32 %v1890_v12, %v1382_v10  ;;  %v1954_v18 = vld [vmem:[%s2881_s1 + $0x2cc] sm:$0xf0]  ;;  %v479_v10 = vunpack.c.h.b16 %v2081_v9  ;;  %v1403_v12 = vor.u32 %v1892_v2, %v1400_v3  ;;  %v1888_v9 = vld [vmem:[%s2881_s1 + $0xc4] sm:$0xf] }
   0x7   :  { %v1511_v16 = vor.u32 %v1922_v14, %v1510_v13  ;;  %v1638_v17 = vld [vmem:[%s2881_s1 + $0x2c0] sm:$0xf]  ;;  %v594_v20 = vpack.c.b16 %v478_v11, %v478_v11  ;;  %v1974_v22 = vld [vmem:[%s2881_s1 + $0x36c] sm:$0xf0] }
   0x8   :  { %v1718_v19 = vld [vmem:[%s2881_s1 + $0x360] sm:$0xf]  ;;  %v1639_v21 = vor.u32 %v1954_v18, %v1638_v17  ;;  %v1886_v24 = vld [vmem:[%s2881_s1 + $0xac] sm:$0xf0]  ;;  %727 = vmatpush.bf16.msra.mxu0 %v1383_v15  ;;  %v1384_v17 = vld [vmem:[%s2881_s1 + $0xd0] sm:$0xf0] }
   0x9   :  { %v1366_v23 = vld [vmem:[%s2881_s1 + $0xa0] sm:$0xf]  ;;  %v1918_v26 = vld [vmem:[%s2881_s1 + $0x1ac] sm:$0xf0]  ;;  %v715_v28 = vsel %vm713_vm0, %v594_v20, 0  ;;  %740 = vmatpush.bf16.msra.mxu1 %v1511_v16  ;;  %v1719_v31 = vor.u32 %v1974_v22, %v1718_v19 }
   0xa   :  { %v1494_v25 = vld [vmem:[%s2881_s1 + $0x1a0] sm:$0xf]  ;;  %v1367_v29 = vor.u32 %v1886_v24, %v1366_v23  ;;  %v1950_v30 = vld [vmem:[%s2881_s1 + $0x2ac] sm:$0xf0]  ;;  %768 = vmatpush.bf16.msra.mxu3 %v715_v28  ;;  %753 = vmatpush.bf16.msra.mxu2 %v1639_v21  ;;  %v595_v24 = vpack.c.b16 %v479_v10, %v479_v10  ;;  %v1924_v28 = vld [vmem:[%s2881_s1 + $0x1e4] sm:$0xf] }
   0xb   :  { %v1622_v27 = vld [vmem:[%s2881_s1 + $0x2a0] sm:$0xf]  ;;  %v1495_v32 = vor.u32 %v1918_v26, %v1494_v25  ;;  %v1882_v35 = vld [vmem:[%s2881_s1 + $0x8c] sm:$0xf0]  ;;  %v1387_v26 = vor.u32 %v1888_v9, %v1384_v17  ;;  %v1872_v10 = vld [vmem:[%s2881_s1 + $0x44] sm:$0xf] }
   0xc   :  { %v1702_v33 = vld [vmem:[%s2881_s1 + $0x340] sm:$0xf]  ;;  %v1623_v36 = vor.u32 %v1950_v30, %v1622_v27  ;;  %v1970_v37 = vld [vmem:[%s2881_s1 + $0x34c] sm:$0xf0]  ;;  %728 = vmatpush.bf16.msra.mxu0 %v1367_v29  ;;  %v1528_v29 = vld [vmem:[%s2881_s1 + $0x1f0] sm:$0xf0] }
   0xd   :  { %v1350_v34 = vld [vmem:[%s2881_s1 + $0x80] sm:$0xf]  ;;  %v1914_v39 = vld [vmem:[%s2881_s1 + $0x18c] sm:$0xf0]  ;;  %741 = vmatpush.bf16.msra.mxu1 %v1495_v32  ;;  %v1703_v43 = vor.u32 %v1970_v37, %v1702_v33  ;;  %v1368_v32 = vld [vmem:[%s2881_s1 + $0xb0] sm:$0xf0]  ;;  %v1531_v37 = vor.u32 %v1924_v28, %v1528_v29 }
   0xe   :  { %v1478_v38 = vld [vmem:[%s2881_s1 + $0x180] sm:$0xf]  ;;  %v1946_v41 = vld [vmem:[%s2881_s1 + $0x28c] sm:$0xf0]  ;;  %v1351_v42 = vor.u32 %v1882_v35, %v1350_v34  ;;  %769 = vmatpush.bf16.msra.mxu3 %v1719_v31  ;;  %754 = vmatpush.bf16.msra.mxu2 %v1623_v36  ;;  %v1884_v31 = vld [vmem:[%s2881_s1 + $0xa4] sm:$0xf] }
   0xf   :  { %v1606_v40 = vld [vmem:[%s2881_s1 + $0x280] sm:$0xf]  ;;  %v1479_v44 = vor.u32 %v1914_v39, %v1478_v38  ;;  %v1878_v47 = vld [vmem:[%s2881_s1 + $0x6c] sm:$0xf0]  ;;  %v1956_v34 = vld [vmem:[%s2881_s1 + $0x2e4] sm:$0xf] }
  0x10   :  { %v1686_v45 = vld [vmem:[%s2881_s1 + $0x320] sm:$0xf]  ;;  %v1607_v48 = vor.u32 %v1946_v41, %v1606_v40  ;;  %v1966_v49 = vld [vmem:[%s2881_s1 + $0x32c] sm:$0xf0]  ;;  %729 = vmatpush.bf16.msra.mxu0 %v1351_v42  ;;  %v1656_v35 = vld [vmem:[%s2881_s1 + $0x2f0] sm:$0xf0]  ;;  %v1371_v41 = vor.u32 %v1884_v31, %v1368_v32 }
  0x11   :  { %v1334_v46 = vld [vmem:[%s2881_s1 + $0x60] sm:$0xf]  ;;  %v1910_v51 = vld [vmem:[%s2881_s1 + $0x16c] sm:$0xf0]  ;;  %742 = vmatpush.bf16.msra.mxu1 %v1479_v44  ;;  %v1687_v56 = vor.u32 %v1966_v49, %v1686_v45  ;;  %v718_v38 = vsel %vm713_vm0, %v595_v24, 0  ;;  %v1659_v44 = vor.u32 %v1956_v34, %v1656_v35 }
  0x12   :  { %v1462_v50 = vld [vmem:[%s2881_s1 + $0x160] sm:$0xf]  ;;  %v1942_v53 = vld [vmem:[%s2881_s1 + $0x26c] sm:$0xf0]  ;;  %v1335_v54 = vor.u32 %v1878_v47, %v1334_v46  ;;  %770 = vmatpush.bf16.msra.mxu3 %v1703_v43  ;;  %755 = vmatpush.bf16.msra.mxu2 %v1607_v48  ;;  %v1920_v42 = vld [vmem:[%s2881_s1 + $0x1c4] sm:$0xf] }
  0x13   :  { %v1590_v52 = vld [vmem:[%s2881_s1 + $0x260] sm:$0xf]  ;;  %v1463_v57 = vor.u32 %v1910_v51, %v1462_v50  ;;  %v1962_v58 = vld [vmem:[%s2881_s1 + $0x30c] sm:$0xf0]  ;;  %v1512_v43 = vld [vmem:[%s2881_s1 + $0x1d0] sm:$0xf0] }
  0x14   :  { %v1670_v55 = vld [vmem:[%s2881_s1 + $0x300] sm:$0xf]  ;;  %v1874_v60 = vld [vmem:[%s2881_s1 + $0x4c] sm:$0xf0]  ;;  %v1591_v61 = vor.u32 %v1942_v53, %v1590_v52  ;;  %730 = vmatpush.bf16.msra.mxu0 %v1335_v54  ;;  %v1880_v45 = vld [vmem:[%s2881_s1 + $0x84] sm:$0xf]  ;;  %v1515_v51 = vor.u32 %v1920_v42, %v1512_v43 }
  0x15   :  { %v1318_v59 = vld [vmem:[%s2881_s1 + $0x40] sm:$0xf]  ;;  %v1906_v63 = vld [vmem:[%s2881_s1 + $0x14c] sm:$0xf0]  ;;  %743 = vmatpush.bf16.msra.mxu1 %v1463_v57  ;;  %v1671_v5 = vor.u32 %v1962_v58, %v1670_v55  ;;  %v1352_v46 = vld [vmem:[%s2881_s1 + $0x90] sm:$0xf0] }
  0x16   :  { %v1446_v62 = vld [vmem:[%s2881_s1 + $0x140] sm:$0xf]  ;;  %v1938_v1 = vld [vmem:[%s2881_s1 + $0x24c] sm:$0xf0]  ;;  %v1319_v4 = vor.u32 %v1874_v60, %v1318_v59  ;;  %771 = vmatpush.bf16.msra.mxu3 %v1687_v56  ;;  %756 = vmatpush.bf16.msra.mxu2 %v1591_v61  ;;  %v1952_v47 = vld [vmem:[%s2881_s1 + $0x2c4] sm:$0xf]  ;;  %v1355_v52 = vor.u32 %v1880_v45, %v1352_v46 }
  0x17   :  { %v1574_v0 = vld [vmem:[%s2881_s1 + $0x240] sm:$0xf]  ;;  %v1447_v6 = vor.u32 %v1906_v63, %v1446_v62  ;;  %v1870_v8 = vld [vmem:[%s2881_s1 + $0x2c] sm:$0xf0]  ;;  %v1640_v48 = vld [vmem:[%s2881_s1 + $0x2d0] sm:$0xf0] }
  0x18   :  { %v1302_v7 = vld [vmem:[%s2881_s1 + $0x20] sm:$0xf]  ;;  %v1575_v11 = vor.u32 %v1938_v1, %v1574_v0  ;;  %v1902_v14 = vld [vmem:[%s2881_s1 + $0x12c] sm:$0xf0]  ;;  %731 = vmatpush.bf16.msra.mxu0 %v1319_v4  ;;  %v1972_v49 = vld [vmem:[%s2881_s1 + $0x364] sm:$0xf]  ;;  %v1643_v55 = vor.u32 %v1952_v47, %v1640_v48 }
  0x19   :  { %v1430_v13 = vld [vmem:[%s2881_s1 + $0x120] sm:$0xf]  ;;  %v1934_v16 = vld [vmem:[%s2881_s1 + $0x22c] sm:$0xf0]  ;;  %v1303_v18 = vor.u32 %v1870_v8, %v1302_v7  ;;  %744 = vmatpush.bf16.msra.mxu1 %v1447_v6  ;;  %v1720_v50 = vld [vmem:[%s2881_s1 + $0x370] sm:$0xf0] }
  0x1a   :  { %v1558_v15 = vld [vmem:[%s2881_s1 + $0x220] sm:$0xf]  ;;  %772 = vmatpush.bf16.msra.mxu3 %v1671_v5  ;;  %v1431_v20 = vor.u32 %v1902_v14, %v1430_v13  ;;  %v1866_v21 = vld [vmem:[%s2881_s1 + $0xc] sm:$0xf0]  ;;  %757 = vmatpush.bf16.msra.mxu2 %v1575_v11  ;;  %v1916_v53 = vld [vmem:[%s2881_s1 + $0x1a4] sm:$0xf]  ;;  %v1723_v56 = vor.u32 %v1972_v49, %v1720_v50 }
  0x1b   :  { %v1286_v19 = vld [vmem:[%s2881_s1] sm:$0xf]  ;;  %v1898_v23 = vld [vmem:[%s2881_s1 + $0x10c] sm:$0xf0]  ;;  %v1559_v25 = vor.u32 %v1934_v16, %v1558_v15  ;;  %v1496_v54 = vld [vmem:[%s2881_s1 + $0x1b0] sm:$0xf0] }
  0x1c   :  { %v1414_v22 = vld [vmem:[%s2881_s1 + $0x100] sm:$0xf]  ;;  %v1930_v30 = vld [vmem:[%s2881_s1 + $0x20c] sm:$0xf0]  ;;  %732 = vmatpush.bf16.msra.mxu0 %v1303_v18  ;;  %v1287_v33 = vor.u32 %v1866_v21, %v1286_v19  ;;  %v1876_v57 = vld [vmem:[%s2881_s1 + $0x64] sm:$0xf]  ;;  %v1499_v63 = vor.u32 %v1916_v53, %v1496_v54 }
  0x1d   :  { %v1542_v27 = vld [vmem:[%s2881_s1 + $0x200] sm:$0xf]  ;;  %745 = vmatpush.bf16.msra.mxu1 %v1431_v20  ;;  %v1415_v36 = vor.u32 %v1898_v23, %v1414_v22  ;;  %v1336_v58 = vld [vmem:[%s2881_s1 + $0x70] sm:$0xf0]  ;;  %v1948_v59 = vld [vmem:[%s2881_s1 + $0x2a4] sm:$0xf] }
  0x1e   :  { %778 = vmatpush.bf16.msrb.mxu3 %v1403_v12  ;;  %v16_v39 = vld [vmem:[%s2880_s0] sm:$0xf]  ;;  %758 = vmatpush.bf16.msra.mxu2 %v1559_v25  ;;  %v1543_v40 = vor.u32 %v1930_v30, %v1542_v27  ;;  %v1624_v60 = vld [vmem:[%s2881_s1 + $0x2b0] sm:$0xf0]  ;;  %v1968_v61 = vld [vmem:[%s2881_s1 + $0x344] sm:$0xf]  ;;  %v1339_v3 = vor.u32 %v1876_v57, %v1336_v58 }
  0x1f   :  { %132 = vst [vmem:[#allocation1] ss:$9 sm:$0xff] %v16_v39  ;;  %v1704_v62 = vld [vmem:[%s2881_s1 + $0x350] sm:$0xf0]  ;;  %v1912_v4 = vld [vmem:[%s2881_s1 + $0x184] sm:$0xf]  ;;  %v1627_v7 = vor.u32 %v1948_v59, %v1624_v60 }
  0x20   :  { %733 = vmatpush.bf16.msra.mxu0 %v1287_v33  ;;  %v1480_v5 = vld [vmem:[%s2881_s1 + $0x190] sm:$0xf0]  ;;  %v1707_v8 = vor.u32 %v1968_v61, %v1704_v62  ;;  %v1944_v12 = vld [vmem:[%s2881_s1 + $0x284] sm:$0xf]  ;;  %v1406_v28 = vld [vmem:[%s2881_s1 + $0xe8] sm:$0xf] }
  0x21   :  { %746 = vmatpush.bf16.msra.mxu1 %v1415_v36  ;;  %v1320_v11 = vld [vmem:[%s2881_s1 + $0x50] sm:$0xf0]  ;;  %v1964_v14 = vld [vmem:[%s2881_s1 + $0x324] sm:$0xf]  ;;  %v1483_v16 = vor.u32 %v1912_v4, %v1480_v5  ;;  %v1895_v29 = vld [vmem:[%s2881_s1 + $0xf4] sm:$0xf0] }
  0x22   :  { %779 = vmatpush.bf16.msrb.mxu3 %v1387_v26  ;;  %759 = vmatpush.bf16.msra.mxu2 %v1543_v40  ;;  %v1608_v13 = vld [vmem:[%s2881_s1 + $0x290] sm:$0xf0]  ;;  %v1323_v9 = vor.u32 %v1872_v10, %v1320_v11  ;;  %v1908_v17 = vld [vmem:[%s2881_s1 + $0x164] sm:$0xf]  ;;  %v1534_v40 = vld [vmem:[%s2881_s1 + $0x1e8] sm:$0xf] }
  0x23   :  { %v1688_v15 = vld [vmem:[%s2881_s1 + $0x330] sm:$0xf0]  ;;  %v1611_v19 = vor.u32 %v1944_v12, %v1608_v13  ;;  %v1868_v21 = vld [vmem:[%s2881_s1 + $0x24] sm:$0xf]  ;;  %v1390_v43 = vld [vmem:[%s2881_s1 + $0xc8] sm:$0xf] }
  0x24   :  { %791 = vmatpush.bf16.msrb.mxu0 %v1531_v37  ;;  %v1464_v18 = vld [vmem:[%s2881_s1 + $0x170] sm:$0xf0]  ;;  %v1691_v20 = vor.u32 %v1964_v14, %v1688_v15  ;;  %v1940_v23 = vld [vmem:[%s2881_s1 + $0x264] sm:$0xf]  ;;  %v2424_v48 = vld [vmem:[%s2881_s1 + $0x388] sm:$0x11] }
  0x25   :  { %804 = vmatpush.bf16.msrb.mxu1 %v1659_v44  ;;  %v1304_v22 = vld [vmem:[%s2881_s1 + $0x30] sm:$0xf0]  ;;  %v1960_v25 = vld [vmem:[%s2881_s1 + $0x304] sm:$0xf]  ;;  %v1467_v27 = vor.u32 %v1908_v17, %v1464_v18  ;;  %v1891_v44 = vld [vmem:[%s2881_s1 + $0xd4] sm:$0xf0]  ;;  %v480_v59 = vunpack.c.l.b16 %v2424_v48 }
  0x26   :  { %780 = vmatpush.bf16.msrb.mxu3 %v1371_v41  ;;  %820 = vmatpush.bf16.msrb.mxu2 %v718_v38  ;;  %v2318_v0 = vld [vmem:[#allocation1 + $0x1b] sm:$0xff]  ;;  %v2320_v1 = vld [vmem:[#allocation1 + $0x12] sm:$0xff]  ;;  %v2331_v6 = vld [vmem:[#allocation1 + $0x9] sm:$0xff]  ;;  %v1307_v30 = vor.u32 %v1868_v21, %v1304_v22  ;;  %v1407_v38 = vor.u32 %v1895_v29, %v1406_v28 }
  0x27   :  { %v2322_v2 = vld [vmem:[#allocation1] sm:$0xff]  ;;  %760 = vmatmul.bf16.vlgmr.msra.gmra.mxu2 %v2320_v1  ;;  %1732 = vmatmul.msk.bf16.vlgmr.msra.gmra.mxu3 %vm710_vm1, %v2318_v0  ;;  %v1592_v24 = vld [vmem:[%s2881_s1 + $0x270] sm:$0xf0]  ;;  %v1927_v41 = vld [vmem:[%s2881_s1 + $0x1f4] sm:$0xf0]  ;;  %v596_v15 = vpack.c.b16 %v480_v59, %v480_v59 }
  0x28   :  { %792 = vmatpush.bf16.msrb.mxu0 %v1515_v51  ;;  %747 = vmatmul.bf16.vlgmr.msra.gmra.mxu1 %v2331_v6  ;;  %v1672_v26 = vld [vmem:[%s2881_s1 + $0x310] sm:$0xf0]  ;;  %v1904_v31 = vld [vmem:[%s2881_s1 + $0x144] sm:$0xf]  ;;  %v1595_v33 = vor.u32 %v1940_v23, %v1592_v24  ;;  %v1535_v50 = vor.u32 %v1927_v41, %v1534_v40  ;;  %v1518_v54 = vld [vmem:[%s2881_s1 + $0x1c8] sm:$0xf] }
  0x29   :  { %805 = vmatpush.bf16.msrb.mxu1 %v1643_v55  ;;  %734 = vmatmul.bf16.vlgmr.msra.gmra.mxu0 %v2322_v2  ;;  %v1448_v32 = vld [vmem:[%s2881_s1 + $0x150] sm:$0xf0]  ;;  %v1675_v34 = vor.u32 %v1960_v25, %v1672_v26  ;;  %v1864_v35 = vld [vmem:[%s2881_s1 + $0x4] sm:$0xf]  ;;  %v1923_v55 = vld [vmem:[%s2881_s1 + $0x1d4] sm:$0xf0] }
  0x2a   :  { %781 = vmatpush.bf16.msrb.mxu3 %v1355_v52  ;;  %821 = vmatpush.bf16.msrb.mxu2 %v1723_v56  ;;  %v1288_v36 = vld [vmem:[%s2881_s1 + $0x10] sm:$0xf0]  ;;  %v1936_v37 = vld [vmem:[%s2881_s1 + $0x244] sm:$0xf]  ;;  %v1451_v42 = vor.u32 %v1904_v31, %v1448_v32  ;;  %v1391_v52 = vor.u32 %v1891_v44, %v1390_v43  ;;  %v1374_v57 = vld [vmem:[%s2881_s1 + $0xa8] sm:$0xf] }
  0x2b   :  { %v1576_v39 = vld [vmem:[%s2881_s1 + $0x250] sm:$0xf0]  ;;  %v1291_v45 = vor.u32 %v1864_v35, %v1288_v36  ;;  %v1900_v46 = vld [vmem:[%s2881_s1 + $0x124] sm:$0xf]  ;;  %v1887_v58 = vld [vmem:[%s2881_s1 + $0xb4] sm:$0xf0] }
  0x2c   :  { %793 = vmatpush.bf16.msrb.mxu0 %v1499_v63  ;;  %v1432_v47 = vld [vmem:[%s2881_s1 + $0x130] sm:$0xf0]  ;;  %v1579_v49 = vor.u32 %v1936_v37, %v1576_v39  ;;  %v1932_v51 = vld [vmem:[%s2881_s1 + $0x224] sm:$0xf]  ;;  %v1519_v63 = vor.u32 %v1923_v55, %v1518_v54  ;;  %v1662_v4 = vld [vmem:[%s2881_s1 + $0x2e8] sm:$0xf] }
  0x2d   :  { %806 = vmatpush.bf16.msrb.mxu1 %v1627_v7  ;;  %v1560_v53 = vld [vmem:[%s2881_s1 + $0x230] sm:$0xf0]  ;;  %v1435_v56 = vor.u32 %v1900_v46, %v1432_v47  ;;  %v1896_v60 = vld [vmem:[%s2881_s1 + $0x104] sm:$0xf]  ;;  %v1959_v5 = vld [vmem:[%s2881_s1 + $0x2f4] sm:$0xf0]  ;;  %v1375_v7 = vor.u32 %v1887_v58, %v1374_v57 }
  0x2e   :  { %782 = vmatpush.bf16.msrb.mxu3 %v1339_v3  ;;  %822 = vmatpush.bf16.msrb.mxu2 %v1707_v8  ;;  %v1416_v61 = vld [vmem:[%s2881_s1 + $0x110] sm:$0xf0]  ;;  %v1563_v62 = vor.u32 %v1932_v51, %v1560_v53  ;;  %v1928_v3 = vld [vmem:[%s2881_s1 + $0x204] sm:$0xf]  ;;  %v1502_v10 = vld [vmem:[%s2881_s1 + $0x1a8] sm:$0xf] }
  0x2f   :  { %v1544_v8 = vld [vmem:[%s2881_s1 + $0x210] sm:$0xf0]  ;;  %v1919_v11 = vld [vmem:[%s2881_s1 + $0x1b4] sm:$0xf0]  ;;  %v1419_v12 = vor.u32 %v1896_v60, %v1416_v61  ;;  %v1358_v13 = vld [vmem:[%s2881_s1 + $0x88] sm:$0xf] }
  0x30   :  { %794 = vmatpush.bf16.msrb.mxu0 %v1483_v16  ;;  %v1883_v14 = vld [vmem:[%s2881_s1 + $0x94] sm:$0xf0]  ;;  %v1663_v16 = vor.u32 %v1959_v5, %v1662_v4  ;;  %v1503_v17 = vor.u32 %v1919_v11, %v1502_v10  ;;  %v1486_v18 = vld [vmem:[%s2881_s1 + $0x188] sm:$0xf]  ;;  %v721_v25 = vsel %vm713_vm0, %v596_v15, 0 }
  0x31   :  { %807 = vmatpush.bf16.msrb.mxu1 %v1611_v19  ;;  %v1646_v19 = vld [vmem:[%s2881_s1 + $0x2c8] sm:$0xf]  ;;  %v1359_v21 = vor.u32 %v1883_v14, %v1358_v13  ;;  %v1915_v22 = vld [vmem:[%s2881_s1 + $0x194] sm:$0xf0]  ;;  %v1893_v4 = vld [vmem:[%s2881_s1 + $0xec] sm:$0xf] }
  0x32   :  { %783 = vmatpush.bf16.msrb.mxu3 %v1323_v9  ;;  %823 = vmatpush.bf16.msrb.mxu2 %v1691_v20  ;;  %v1547_v9 = vor.u32 %v1928_v3, %v1544_v8  ;;  %v1955_v20 = vld [vmem:[%s2881_s1 + $0x2d4] sm:$0xf0]  ;;  %v1342_v23 = vld [vmem:[%s2881_s1 + $0x68] sm:$0xf]  ;;  %v1487_v29 = vor.u32 %v1915_v22, %v1486_v18  ;;  %v1925_v8 = vld [vmem:[%s2881_s1 + $0x1ec] sm:$0xf] }
  0x33   :  { %v1879_v24 = vld [vmem:[%s2881_s1 + $0x74] sm:$0xf0]  ;;  %v1726_v26 = vld [vmem:[%s2881_s1 + $0x368] sm:$0xf]  ;;  %v1647_v28 = vor.u32 %v1955_v20, %v1646_v19  ;;  %v1536_v10 = vld [vmem:[%s2881_s1 + $0x1f8] sm:$0xf0] }
  0x34   :  { %795 = vmatpush.bf16.msrb.mxu0 %v1467_v27  ;;  %v1975_v27 = vld [vmem:[%s2881_s1 + $0x374] sm:$0xf0]  ;;  %v1343_v32 = vor.u32 %v1879_v24, %v1342_v23  ;;  %v1326_v36 = vld [vmem:[%s2881_s1 + $0x48] sm:$0xf]  ;;  %v1539_v18 = vor.u32 %v1925_v8, %v1536_v10  ;;  %v1957_v19 = vld [vmem:[%s2881_s1 + $0x2ec] sm:$0xf] }
  0x35   :  { %808 = vmatpush.bf16.msrb.mxu1 %v1595_v33  ;;  %v1951_v31 = vld [vmem:[%s2881_s1 + $0x2b4] sm:$0xf0]  ;;  %v1727_v33 = vor.u32 %v1975_v27, %v1726_v26  ;;  %v1454_v46 = vld [vmem:[%s2881_s1 + $0x148] sm:$0xf]  ;;  %v1664_v20 = vld [vmem:[%s2881_s1 + $0x2f8] sm:$0xf0] }
  0x36   :  { %784 = vmatpush.bf16.msrb.mxu3 %v1307_v30  ;;  %824 = vmatpush.bf16.msrb.mxu2 %v1675_v34  ;;  %v1630_v30 = vld [vmem:[%s2881_s1 + $0x2a8] sm:$0xf]  ;;  %v1911_v35 = vld [vmem:[%s2881_s1 + $0x174] sm:$0xf0]  ;;  %v1392_v23 = vld [vmem:[%s2881_s1 + $0xd8] sm:$0xf0] }
  0x37   :  { %v1470_v34 = vld [vmem:[%s2881_s1 + $0x168] sm:$0xf]  ;;  %v1875_v37 = vld [vmem:[%s2881_s1 + $0x54] sm:$0xf0]  ;;  %v1631_v40 = vor.u32 %v1951_v31, %v1630_v30  ;;  %v1921_v24 = vld [vmem:[%s2881_s1 + $0x1cc] sm:$0xf]  ;;  %v481_v30 = vunpack.c.h.b16 %v2424_v48 }
  0x38   :  { %796 = vmatpush.bf16.msrb.mxu0 %v1451_v42  ;;  %v1971_v39 = vld [vmem:[%s2881_s1 + $0x354] sm:$0xf0]  ;;  %v1471_v41 = vor.u32 %v1911_v35, %v1470_v34  ;;  %v1614_v42 = vld [vmem:[%s2881_s1 + $0x288] sm:$0xf]  ;;  %v1327_v44 = vor.u32 %v1875_v37, %v1326_v36 }
  0x39   :  { %1733 = vmatmul.msk.bf16.vlgmr.msrb.gmra.mxu2 %vm710_vm1, %v2318_v0  ;;  %809 = vmatpush.bf16.msrb.mxu1 %v1579_v49  ;;  %v1947_v43 = vld [vmem:[%s2881_s1 + $0x294] sm:$0xf0]  ;;  %v1310_v49 = vld [vmem:[%s2881_s1 + $0x28] sm:$0xf] }
  0x3a   :  { %830 = vmatpush.bf16.msra.mxu2 %v1407_v38  ;;  %785 = vmatpush.bf16.msrb.mxu3 %v1291_v45  ;;  %v1710_v38 = vld [vmem:[%s2881_s1 + $0x348] sm:$0xf]  ;;  %v1907_v47 = vld [vmem:[%s2881_s1 + $0x154] sm:$0xf0]  ;;  %v1615_v53 = vor.u32 %v1947_v43, %v1614_v42 }
  0x3b   :  { %v1711_v45 = vor.u32 %v1971_v39, %v1710_v38  ;;  %v1694_v51 = vld [vmem:[%s2881_s1 + $0x328] sm:$0xf]  ;;  %v1455_v54 = vor.u32 %v1907_v47, %v1454_v46  ;;  %v1943_v57 = vld [vmem:[%s2881_s1 + $0x274] sm:$0xf0] }
  0x3c   :  { %797 = vmatpush.bf16.msrb.mxu0 %v1435_v56  ;;  %v1438_v55 = vld [vmem:[%s2881_s1 + $0x128] sm:$0xf]  ;;  %v1903_v60 = vld [vmem:[%s2881_s1 + $0x134] sm:$0xf0] }
  0x3d   :  { %786 = vmatmul.bf16.vlgmr.msrb.gmra.mxu3 %v2322_v2  ;;  %810 = vmatpush.bf16.msrb.mxu1 %v1563_v62  ;;  %v1598_v56 = vld [vmem:[%s2881_s1 + $0x268] sm:$0xf]  ;;  %v1867_v62 = vld [vmem:[%s2881_s1 + $0x14] sm:$0xf0]  ;;  %v1439_v11 = vor.u32 %v1903_v60, %v1438_v55 }
  0x3e   :  { %843 = vmatpush.bf16.msra.mxu3 %v1535_v50  ;;  %831 = vmatpush.bf16.msra.mxu2 %v1391_v52  ;;  %v1871_v50 = vld [vmem:[%s2881_s1 + $0x34] sm:$0xf0]  ;;  %v1294_v61 = vld [vmem:[%s2881_s1 + $0x8] sm:$0xf]  ;;  %v1599_v5 = vor.u32 %v1943_v57, %v1598_v56 }
  0x3f   :  { %v1967_v52 = vld [vmem:[%s2881_s1 + $0x334] sm:$0xf0]  ;;  %v1311_v58 = vor.u32 %v1871_v50, %v1310_v49  ;;  %v1295_v14 = vor.u32 %v1867_v62, %v1294_v61  ;;  %v1566_v27 = vld [vmem:[%s2881_s1 + $0x228] sm:$0xf] }
  0x40   :  { %798 = vmatpush.bf16.msrb.mxu0 %v1419_v12  ;;  %v1695_v59 = vor.u32 %v1967_v52, %v1694_v51  ;;  %v1963_v3 = vld [vmem:[%s2881_s1 + $0x314] sm:$0xf0]  ;;  %v1582_v12 = vld [vmem:[%s2881_s1 + $0x248] sm:$0xf] }
  0x41   :  { %811 = vmatpush.bf16.msrb.mxu1 %v1547_v9  ;;  %v1939_v13 = vld [vmem:[%s2881_s1 + $0x254] sm:$0xf0] }
  0x42   :  { %844 = vmatpush.bf16.msra.mxu3 %v1519_v63  ;;  %832 = vmatpush.bf16.msra.mxu2 %v1375_v7  ;;  %v1678_v63 = vld [vmem:[%s2881_s1 + $0x308] sm:$0xf]  ;;  %v1408_v7 = vld [vmem:[%s2881_s1 + $0xf8] sm:$0xf0]  ;;  %v1899_v9 = vld [vmem:[%s2881_s1 + $0x114] sm:$0xf0]  ;;  %v1583_v22 = vor.u32 %v1939_v13, %v1582_v12 }
  0x43   :  { %799 = vmatmul.bf16.vlgmr.msrb.gmra.mxu0 %v2331_v6  ;;  %v1679_v15 = vor.u32 %v1963_v3, %v1678_v63 }
  0x44   :  { %856 = vmatpush.bf16.msra.mxu0 %v1663_v16  ;;  %812 = vmatmul.bf16.vlgmr.msrb.gmra.mxu1 %v2320_v1  ;;  %v1422_v16 = vld [vmem:[%s2881_s1 + $0x108] sm:$0xf] }
  0x45   :  { %872 = vmatpush.bf16.msra.mxu1 %v721_v25  ;;  %v1520_v25 = vld [vmem:[%s2881_s1 + $0x1d8] sm:$0xf0]  ;;  %v1423_v26 = vor.u32 %v1899_v9, %v1422_v16 }
  0x46   :  { %845 = vmatpush.bf16.msra.mxu3 %v1503_v17  ;;  %833 = vmatpush.bf16.msra.mxu2 %v1359_v21  ;;  %v1411_v17 = vor.u32 %v1893_v4, %v1408_v7  ;;  %v1889_v21 = vld [vmem:[%s2881_s1 + $0xcc] sm:$0xf] }
  0x48   :  { %857 = vmatpush.bf16.msra.mxu0 %v1647_v28  ;;  %v1935_v28 = vld [vmem:[%s2881_s1 + $0x234] sm:$0xf0] }
  0x49   :  { %873 = vmatpush.bf16.msra.mxu1 %v1727_v33 }
  0x4a   :  { %846 = vmatpush.bf16.msra.mxu3 %v1487_v29  ;;  %834 = vmatpush.bf16.msra.mxu2 %v1343_v32  ;;  %v1667_v29 = vor.u32 %v1957_v19, %v1664_v20 }
  0x4c   :  { %858 = vmatpush.bf16.msra.mxu0 %v1631_v40 }
  0x4d   :  { %874 = vmatpush.bf16.msra.mxu1 %v1711_v45 }
  0x4e   :  { %847 = vmatpush.bf16.msra.mxu3 %v1471_v41  ;;  %835 = vmatpush.bf16.msra.mxu2 %v1327_v44 }
  0x50   :  { %859 = vmatpush.bf16.msra.mxu0 %v1615_v53 }
  0x51   :  { %875 = vmatpush.bf16.msra.mxu1 %v1695_v59 }
  0x52   :  { %848 = vmatpush.bf16.msra.mxu3 %v1455_v54  ;;  %836 = vmatpush.bf16.msra.mxu2 %v1311_v58 }
  0x54   :  { %860 = vmatpush.bf16.msra.mxu0 %v1599_v5 }
  0x55   :  { %876 = vmatpush.bf16.msra.mxu1 %v1679_v15 }
  0x56   :  { %849 = vmatpush.bf16.msra.mxu3 %v1439_v11  ;;  %837 = vmatpush.bf16.msra.mxu2 %v1295_v14 }
  0x57   :  { %8 = vsyncpa [#allocation3], 0  ;;  %v1395_v31 = vor.u32 %v1889_v21, %v1392_v23  ;;  %v1523_v32 = vor.u32 %v1921_v24, %v1520_v25  ;;  %v1953_v33 = vld [vmem:[%s2881_s1 + $0x2cc] sm:$0xf]  ;;  %v1648_v34 = vld [vmem:[%s2881_s1 + $0x2d8] sm:$0xf0]  ;;  %v1567_v36 = vor.u32 %v1935_v28, %v1566_v27  ;;  %v597_v42 = vpack.c.b16 %v481_v30, %v481_v30 }
  0x58   :  { %v1885_v35 = vld [vmem:[%s2881_s1 + $0xac] sm:$0xf]  ;;  %861 = vmatpush.bf16.msra.mxu0 %v1583_v22  ;;  %v1376_v48 = vld [vmem:[%s2881_s1 + $0xb8] sm:$0xf0]  ;;  %v1550_v39 = vld [vmem:[%s2881_s1 + $0x208] sm:$0xf]  ;;  %v1651_v41 = vor.u32 %v1953_v33, %v1648_v34  ;;  %1734 = vmatmul.msk.bf16.vlgmr.msra.gmra.mxu1 %vm710_vm1, %v2318_v0 }
  0x59   :  { %882 = vmatpush.bf16.msrb.mxu1 %v1411_v17  ;;  %v1917_v37 = vld [vmem:[%s2881_s1 + $0x1ac] sm:$0xf]  ;;  %v1504_v38 = vld [vmem:[%s2881_s1 + $0x1b8] sm:$0xf0]  ;;  %838 = vmatmul.bf16.vlgmr.msra.gmra.mxu2 %v2322_v2  ;;  %v1931_v40 = vld [vmem:[%s2881_s1 + $0x214] sm:$0xf0]  ;;  %v1379_v43 = vor.u32 %v1885_v35, %v1376_v48 }
  0x5a   :  { %895 = vmatpush.bf16.msrb.mxu2 %v1539_v18  ;;  %850 = vmatpush.bf16.msra.mxu3 %v1423_v26  ;;  %v1507_v44 = vor.u32 %v1917_v37, %v1504_v38  ;;  %v1949_v45 = vld [vmem:[%s2881_s1 + $0x2ac] sm:$0xf]  ;;  %v1632_v46 = vld [vmem:[%s2881_s1 + $0x2b8] sm:$0xf0]  ;;  %v1551_v49 = vor.u32 %v1931_v40, %v1550_v39  ;;  %v724_v54 = vsel %vm713_vm0, %v597_v42, 0  ;;  %vm1254_vm3 = vcmask 1041408  }
  0x5b   :  { %v1881_v47 = vld [vmem:[%s2881_s1 + $0x8c] sm:$0xf]  ;;  %v1360_v50 = vld [vmem:[%s2881_s1 + $0x98] sm:$0xf0]  ;;  %v1635_v53 = vor.u32 %v1949_v45, %v1632_v46  ;;  %s1275_s30 = sshll.u32 %s2883_s3, 4  ;;  %s1276_s30 = int_to_ptr.hbm [resolvable:$true] %s1275_s30 }
  0x5c   :  { %862 = vmatpush.bf16.msra.mxu0 %v1567_v36  ;;  %v1913_v51 = vld [vmem:[%s2881_s1 + $0x18c] sm:$0xf]  ;;  %v1488_v52 = vld [vmem:[%s2881_s1 + $0x198] sm:$0xf0]  ;;  %v1363_v57 = vor.u32 %v1881_v47, %v1360_v50  ;;  %v1982_v50 = vld [vmem:[%s2882_s2 + $0x30] sm:$0xff] }
  0x5d   :  { %883 = vmatpush.bf16.msrb.mxu1 %v1395_v31  ;;  %851 = vmatmul.bf16.vlgmr.msra.gmra.mxu3 %v2331_v6  ;;  %v1973_v55 = vld [vmem:[%s2881_s1 + $0x36c] sm:$0xf]  ;;  %v1728_v56 = vld [vmem:[%s2881_s1 + $0x378] sm:$0xf0]  ;;  %v1491_v58 = vor.u32 %v1913_v51, %v1488_v52  ;;  %v1980_v52 = vld [vmem:[%s2882_s2 + $0x20] sm:$0xff] }
  0x5e   :  { %908 = vmatpush.bf16.msrb.mxu3 %v1667_v29  ;;  %896 = vmatpush.bf16.msrb.mxu2 %v1523_v32  ;;  %v1945_v59 = vld [vmem:[%s2881_s1 + $0x28c] sm:$0xf]  ;;  %v1616_v60 = vld [vmem:[%s2881_s1 + $0x298] sm:$0xf0]  ;;  %v1731_v4 = vor.u32 %v1973_v55, %v1728_v56  ;;  %v1988_v55 = vld [vmem:[%s2882_s2 + $0x60] sm:$0xff] }
  0x5f   :  { %v1877_v61 = vld [vmem:[%s2881_s1 + $0x6c] sm:$0xf]  ;;  %v1344_v62 = vld [vmem:[%s2881_s1 + $0x78] sm:$0xf0]  ;;  %v1619_v5 = vor.u32 %v1945_v59, %v1616_v60 }
  0x60   :  { %863 = vmatpush.bf16.msra.mxu0 %v1551_v49  ;;  %v1909_v63 = vld [vmem:[%s2881_s1 + $0x16c] sm:$0xf]  ;;  %v1472_v3 = vld [vmem:[%s2881_s1 + $0x178] sm:$0xf0]  ;;  %v1347_v10 = vor.u32 %v1877_v61, %v1344_v62  ;;  %v1984_v62 = vld [vmem:[%s2882_s2 + $0x40] sm:$0xff] }
  0x61   :  { %884 = vmatpush.bf16.msrb.mxu1 %v1379_v43  ;;  %v1969_v7 = vld [vmem:[%s2881_s1 + $0x34c] sm:$0xf]  ;;  %v1712_v8 = vld [vmem:[%s2881_s1 + $0x358] sm:$0xf0]  ;;  %v1475_v11 = vor.u32 %v1909_v63, %v1472_v3 }
  0x62   :  { %909 = vmatpush.bf16.msrb.mxu3 %v1651_v41  ;;  %897 = vmatpush.bf16.msrb.mxu2 %v1507_v44  ;;  %v1941_v12 = vld [vmem:[%s2881_s1 + $0x26c] sm:$0xf]  ;;  %v1600_v13 = vld [vmem:[%s2881_s1 + $0x278] sm:$0xf0]  ;;  %v1715_v17 = vor.u32 %v1969_v7, %v1712_v8 }
  0x63   :  { %v1873_v14 = vld [vmem:[%s2881_s1 + $0x4c] sm:$0xf]  ;;  %864 = vmatmul.bf16.vlgmr.msra.gmra.mxu0 %v2320_v1  ;;  %v1328_v15 = vld [vmem:[%s2881_s1 + $0x58] sm:$0xf0]  ;;  %v1603_v18 = vor.u32 %v1941_v12, %v1600_v13 }
  0x64   :  { %924 = vmatpush.bf16.msrb.mxu0 %v724_v54  ;;  %v1905_v16 = vld [vmem:[%s2881_s1 + $0x14c] sm:$0xf]  ;;  %v1456_v9 = vld [vmem:[%s2881_s1 + $0x158] sm:$0xf0]  ;;  %v1331_v21 = vor.u32 %v1873_v14, %v1328_v15  ;;  %v1976_v54 = vld [vmem:[%s2882_s2] sm:$0xff] }
  0x65   :  { %885 = vmatpush.bf16.msrb.mxu1 %v1363_v57  ;;  %v1965_v19 = vld [vmem:[%s2881_s1 + $0x32c] sm:$0xf]  ;;  %v1696_v20 = vld [vmem:[%s2881_s1 + $0x338] sm:$0xf0]  ;;  %v1459_v22 = vor.u32 %v1905_v16, %v1456_v9  ;;  %v1986_v57 = vld [vmem:[%s2882_s2 + $0x50] sm:$0xff] }
  0x66   :  { %910 = vmatpush.bf16.msrb.mxu3 %v1635_v53  ;;  %898 = vmatpush.bf16.msrb.mxu2 %v1491_v58  ;;  %v1937_v23 = vld [vmem:[%s2881_s1 + $0x24c] sm:$0xf]  ;;  %v1584_v24 = vld [vmem:[%s2881_s1 + $0x258] sm:$0xf0]  ;;  %v1699_v29 = vor.u32 %v1965_v19, %v1696_v20  ;;  %v1996_v14 = vld [vmem:[%s2882_s2 + $0xa0] sm:$0xff] }
  0x67   :  { %v1869_v25 = vld [vmem:[%s2881_s1 + $0x2c] sm:$0xf]  ;;  %v1312_v26 = vld [vmem:[%s2881_s1 + $0x38] sm:$0xf0]  ;;  %v1587_v30 = vor.u32 %v1937_v23, %v1584_v24  ;;  %v1994_v19 = vld [vmem:[%s2882_s2 + $0x90] sm:$0xff] }
  0x68   :  { %925 = vmatpush.bf16.msrb.mxu0 %v1731_v4  ;;  %v1901_v27 = vld [vmem:[%s2881_s1 + $0x12c] sm:$0xf]  ;;  %v1440_v28 = vld [vmem:[%s2881_s1 + $0x138] sm:$0xf0]  ;;  %v1315_v33 = vor.u32 %v1869_v25, %v1312_v26  ;;  %v1998_v4 = vld [vmem:[%s2882_s2 + $0xb0] sm:$0xff] }
  0x69   :  { %886 = vmatpush.bf16.msrb.mxu1 %v1347_v10  ;;  %v1961_v31 = vld [vmem:[%s2881_s1 + $0x30c] sm:$0xf]  ;;  %v1680_v32 = vld [vmem:[%s2881_s1 + $0x318] sm:$0xf0]  ;;  %v1443_v34 = vor.u32 %v1901_v27, %v1440_v28  ;;  %v1992_v28 = vld [vmem:[%s2882_s2 + $0x80] sm:$0xff] }
  0x6a   :  { %911 = vmatpush.bf16.msrb.mxu3 %v1619_v5  ;;  %899 = vmatpush.bf16.msrb.mxu2 %v1475_v11  ;;  %v1933_v35 = vld [vmem:[%s2881_s1 + $0x22c] sm:$0xf]  ;;  %v1568_v36 = vld [vmem:[%s2881_s1 + $0x238] sm:$0xf0]  ;;  %v1683_v40 = vor.u32 %v1961_v31, %v1680_v32 }
  0x6b   :  { %v1865_v48 = vld [vmem:[%s2881_s1 + $0xc] sm:$0xf]  ;;  %v1296_v37 = vld [vmem:[%s2881_s1 + $0x18] sm:$0xf0]  ;;  %v1571_v41 = vor.u32 %v1933_v35, %v1568_v36 }
  0x6c   :  { %926 = vmatpush.bf16.msrb.mxu0 %v1715_v17  ;;  %v1897_v38 = vld [vmem:[%s2881_s1 + $0x10c] sm:$0xf]  ;;  %v1424_v39 = vld [vmem:[%s2881_s1 + $0x118] sm:$0xf0]  ;;  %v1299_v43 = vor.u32 %v1865_v48, %v1296_v37  ;;  %v2004_v48 = vld [vmem:[%s2882_s2 + $0xe0] sm:$0xff] }
  0x6d   :  { %887 = vmatpush.bf16.msrb.mxu1 %v1331_v21  ;;  %v1983_v42 = vld [vmem:[%s2882_s2 + $0x38] sm:$0xff]  ;;  %v1427_v44 = vor.u32 %v1897_v38, %v1424_v39  ;;  %v1929_v45 = vld [vmem:[%s2881_s1 + $0x20c] sm:$0xf]  ;;  %v2002_v39 = vld [vmem:[%s2882_s2 + $0xd0] sm:$0xff] }
  0x6e   :  { %912 = vmatpush.bf16.msrb.mxu3 %v1603_v18  ;;  %900 = vmatpush.bf16.msrb.mxu2 %v1459_v22  ;;  %v1552_v46 = vld [vmem:[%s2881_s1 + $0x218] sm:$0xf0]  ;;  %v1981_v51 = vld [vmem:[%s2882_s2 + $0x28] sm:$0xff] }
  0x6f   :  { %v1991_v47 = vld [vmem:[%s2882_s2 + $0x78] sm:$0xff]  ;;  %v1555_v49 = vor.u32 %v1929_v45, %v1552_v46  ;;  %v1989_v53 = vld [vmem:[%s2882_s2 + $0x68] sm:$0xff]  ;;  %v2000_v46 = vld [vmem:[%s2882_s2 + $0xc0] sm:$0xff] }
  0x70   :  { %927 = vmatpush.bf16.msrb.mxu0 %v1699_v29  ;;  %v1987_v56 = vld [vmem:[%s2882_s2 + $0x58] sm:$0xff]  ;;  %v1985_v58 = vld [vmem:[%s2882_s2 + $0x48] sm:$0xff]  ;;  %v2006_v29 = vld [vmem:[%s2882_s2 + $0xf0] sm:$0xff] }
  0x71   :  { %888 = vmatpush.bf16.msrb.mxu1 %v1315_v33  ;;  %v1999_v60 = vld [vmem:[%s2882_s2 + $0xb8] sm:$0xff]  ;;  %v1997_v8 = vld [vmem:[%s2882_s2 + $0xa8] sm:$0xff] }
  0x72   :  { %913 = vmatpush.bf16.msrb.mxu3 %v1587_v30  ;;  %901 = vmatpush.bf16.msrb.mxu2 %v1443_v34  ;;  %v1995_v17 = vld [vmem:[%s2882_s2 + $0x98] sm:$0xff]  ;;  %v1993_v21 = vld [vmem:[%s2882_s2 + $0x88] sm:$0xff] }
  0x73   :  { %v2007_v25 = vld [vmem:[%s2882_s2 + $0xf8] sm:$0xff]  ;;  %v2005_v33 = vld [vmem:[%s2882_s2 + $0xe8] sm:$0xff] }
  0x74   :  { %928 = vmatpush.bf16.msrb.mxu0 %v1683_v40  ;;  %v2003_v37 = vld [vmem:[%s2882_s2 + $0xd8] sm:$0xff] }
  0x75   :  { %889 = vmatpush.bf16.msrb.mxu1 %v1299_v43 }
  0x76   :  { %914 = vmatpush.bf16.msrb.mxu3 %v1571_v41  ;;  %902 = vmatpush.bf16.msrb.mxu2 %v1427_v44  ;;  %v2001_v41 = vld [vmem:[%s2882_s2 + $0xc8] sm:$0xff] }
  0x77   :  { %1735 = vmatmul.msk.bf16.vlgmr.msrb.gmra.mxu0 %vm710_vm1, %v2318_v0  ;;  %v1979_v0 = vld [vmem:[%s2882_s2 + $0x18] sm:$0xff] }
  0x78   :  { %1198 = vmatpush.bf16.msra.mxu0 %v1983_v42  ;;  %890 = vmatmul.bf16.vlgmr.msrb.gmra.mxu1 %v2322_v2  ;;  %v1978_v2 = vld [vmem:[%s2882_s2 + $0x10] sm:$0xff] }
  0x79   :  { %1211 = vmatpush.bf16.msra.mxu1 %v1991_v47  ;;  %903 = vmatmul.bf16.vlgmr.msrb.gmra.mxu2 %v2331_v6  ;;  %v1977_v6 = vld [vmem:[%s2882_s2 + $0x8] sm:$0xff] }
  0x7a   :  { %915 = vmatpush.bf16.msrb.mxu3 %v1555_v49  ;;  %1224 = vmatpush.bf16.msra.mxu2 %v1999_v60 }
  0x7c   :  { %1199 = vmatpush.bf16.msra.mxu0 %v1982_v50 }
  0x7d   :  { %916 = vmatmul.bf16.vlgmr.msrb.gmra.mxu3 %v2320_v1  ;;  %v1990_v1 = vld [vmem:[%s2882_s2 + $0x70] sm:$0xff]  ;;  %s2039_s2 = smov [#allocation2]  }
  0x7e   :  { %1212 = vmatpush.bf16.msra.mxu1 %v1990_v1  ;;  %1225 = vmatpush.bf16.msra.mxu2 %v1998_v4  ;;  %s1273_s1 = sshll.u32 %s2039_s2, 4  ;;  %s1274_s1 = int_to_ptr.vmem [resolvable:$true] %s1273_s1 }
  0x7f   :  { %1237 = vmatpush.bf16.msra.mxu3 %v2007_v25 }
  0x80   :  { %1200 = vmatpush.bf16.msra.mxu0 %v1981_v51 }
  0x82   :  { %1213 = vmatpush.bf16.msra.mxu1 %v1989_v53  ;;  %1226 = vmatpush.bf16.msra.mxu2 %v1997_v8 }
  0x83   :  { %1238 = vmatpush.bf16.msra.mxu3 %v2006_v29 }
  0x84   :  { %1201 = vmatpush.bf16.msra.mxu0 %v1980_v52 }
  0x86   :  { %1214 = vmatpush.bf16.msra.mxu1 %v1988_v55  ;;  %1227 = vmatpush.bf16.msra.mxu2 %v1996_v14 }
  0x87   :  { %1239 = vmatpush.bf16.msra.mxu3 %v2005_v33 }
  0x88   :  { %1202 = vmatpush.bf16.msra.mxu0 %v1979_v0 }
  0x8a   :  { %1215 = vmatpush.bf16.msra.mxu1 %v1987_v56  ;;  %1228 = vmatpush.bf16.msra.mxu2 %v1995_v17 }
  0x8b   :  { %1240 = vmatpush.bf16.msra.mxu3 %v2004_v48 }
  0x8c   :  { %1203 = vmatpush.bf16.msra.mxu0 %v1978_v2 }
  0x8e   :  { %1216 = vmatpush.bf16.msra.mxu1 %v1986_v57  ;;  %1229 = vmatpush.bf16.msra.mxu2 %v1994_v19 }
  0x8f   :  { %1241 = vmatpush.bf16.msra.mxu3 %v2003_v37 }
  0x90   :  { %1204 = vmatpush.bf16.msra.mxu0 %v1977_v6 }
  0x92   :  { %1217 = vmatpush.bf16.msra.mxu1 %v1985_v58  ;;  %1230 = vmatpush.bf16.msra.mxu2 %v1993_v21 }
  0x93   :  { %1242 = vmatpush.bf16.msra.mxu3 %v2002_v39 }
  0x94   :  { %1205 = vmatpush.bf16.msra.mxu0 %v1976_v54 }
  0x96   :  { %1218 = vmatpush.bf16.msra.mxu1 %v1984_v62  ;;  %1231 = vmatpush.bf16.msra.mxu2 %v1992_v28 }
  0x97   :  { %1243 = vmatpush.bf16.msra.mxu3 %v2001_v41 }
  0x9b   :  { %1244 = vmatpush.bf16.msra.mxu3 %v2000_v46 }
  0xa5   :  { %v748_v61 = vpop.f32.mrf.mxu1 }
  0xa6   :  { %v735_v59 = vpop.f32.mrf.mxu0 }
  0xa7   :  { %v749_v63 = vadd.f32 %v748_v61, %v735_v59 }
  0xaa   :  { %v761_v3 = vpop.f32.mrf.mxu2  ;;  %v774_v7 = vpop.f32.mrf.mxu3 }
  0xab   :  { %v762_v5 = vadd.f32 %v761_v3, %v749_v63 }
  0xad   :  { %v775_v10 = vadd.f32 %v774_v7, %v762_v5  ;;  %v750_v13 = vpop.f32.mrf.mxu1 }
  0xae   :  { %v737_v11 = vpop.f32.mrf.mxu0 }
  0xaf   :  { %v934_v12 = vmax.f32 %v775_v10, 0.0  ;;  %v1250_v11 = vlaneseq }
  0xb1   :  { %v938_v15 = vpack.c.bf16 %v934_v12, %v934_v12  ;;  %v1251_v12 = vand.u32 127, %v1250_v11 }
  0xb2   :  { %v763_v16 = vpop.f32.mrf.mxu2  ;;  %v776_v9 = vpop.f32.mrf.mxu3 }
  0xb3   :  { %1206 = vmatmul.bf16.vlgmr.msra.gmra.mxu0 %v938_v15  ;;  %vm1252_vm2 = vcmp.lt.s32.totalorder %v1251_v12, 10 }
  0xbc   :  { %v826_v18 = vpop.f32.mrf.mxu2 }
  0xc0   :  { %v787_v20 = vpop.f32.mrf.mxu3  ;;  %v800_v22 = vpop.f32.mrf.mxu0 }
  0xc1   :  { %v801_v23 = vadd.f32 %v800_v22, %v787_v20  ;;  %v813_v24 = vpop.f32.mrf.mxu1 }
  0xc3   :  { %v814_v26 = vadd.f32 %v813_v24, %v801_v23 }
  0xc4   :  { %v828_v27 = vpop.f32.mrf.mxu2 }
  0xc5   :  { %v827_v30 = vadd.f32 %v826_v18, %v814_v26 }
  0xc7   :  { %v935_v32 = vmax.f32 %v827_v30, 0.0 }
  0xc8   :  { %v789_v31 = vpop.f32.mrf.mxu3  ;;  %v802_v34 = vpop.f32.mrf.mxu0 }
  0xc9   :  { %v939_v35 = vpack.c.bf16 %v935_v32, %v935_v32  ;;  %v815_v36 = vpop.f32.mrf.mxu1 }
  0xcb   :  { %1219 = vmatmul.bf16.vlgmr.msra.gmra.mxu1 %v939_v35 }
  0xd5   :  { %v878_v38 = vpop.f32.mrf.mxu1 }
  0xdc   :  { %v839_v40 = vpop.f32.mrf.mxu2 }
  0xdd   :  { %v880_v43 = vpop.f32.mrf.mxu1 }
  0xe0   :  { %v852_v42 = vpop.f32.mrf.mxu3  ;;  %v865_v45 = vpop.f32.mrf.mxu0 }
  0xe1   :  { %v853_v44 = vadd.f32 %v852_v42, %v839_v40 }
  0xe3   :  { %v866_v47 = vadd.f32 %v865_v45, %v853_v44 }
  0xe4   :  { %v841_v50 = vpop.f32.mrf.mxu2 }
  0xe5   :  { %v879_v49 = vadd.f32 %v878_v38, %v866_v47 }
  0xe7   :  { %v936_v51 = vmax.f32 %v879_v49, 0.0 }
  0xe8   :  { %v854_v52 = vpop.f32.mrf.mxu3  ;;  %v867_v2 = vpop.f32.mrf.mxu0 }
  0xe9   :  { %v940_v0 = vpack.c.bf16 %v936_v51, %v936_v51 }
  0xeb   :  { %1232 = vmatmul.bf16.vlgmr.msra.gmra.mxu2 %v940_v0 }
  0xf4   :  { %v930_v1 = vpop.f32.mrf.mxu0 }
  0xf5   :  { %v891_v6 = vpop.f32.mrf.mxu1 }
  0xfc   :  { %v904_v53 = vpop.f32.mrf.mxu2  ;;  %v932_v54 = vpop.f32.mrf.mxu0 }
  0xfd   :  { %v905_v55 = vadd.f32 %v904_v53, %v891_v6  ;;  %v893_v56 = vpop.f32.mrf.mxu1 }
 0x100   :  { %v917_v57 = vpop.f32.mrf.mxu3 }
 0x101   :  { %v918_v58 = vadd.f32 %v917_v57, %v905_v55 }
 0x103   :  { %v931_v59 = vadd.f32 %v930_v1, %v918_v58 }
 0x104   :  { %v906_v60 = vpop.f32.mrf.mxu2 }
 0x105   :  { %v937_v61 = vmax.f32 %v931_v59, 0.0 }
 0x107   :  { %v941_v62 = vpack.c.bf16 %v937_v61, %v937_v61 }
 0x108   :  { %v919_v63 = vpop.f32.mrf.mxu3 }
 0x109   :  { %1245 = vmatmul.bf16.vlgmr.msra.gmra.mxu3 %v941_v62 }
 0x130   :  { %v1207_v3 = vpop.f32.mrf.mxu0 }
 0x138   :  { %v1209_v4 = vpop.f32.mrf.mxu0 }
 0x148   :  { %v1220_v5 = vpop.f32.mrf.mxu1 }
 0x149   :  { %v1221_v13 = vadd.f32 %v1220_v5, %v1207_v3 }
 0x150   :  { %v1222_v7 = vpop.f32.mrf.mxu1 }
 0x16e   :  { %v1233_v8 = vpop.f32.mrf.mxu2 }
 0x16f   :  { %v1234_v14 = vadd.f32 %v1233_v8, %v1221_v13 }
 0x176   :  { %v1235_v10 = vpop.f32.mrf.mxu2 }
 0x18c   :  { %v1246_v15 = vpop.f32.mrf.mxu3 }
 0x18d   :  { %v1247_v16 = vadd.f32 %v1246_v15, %v1234_v14 }
 0x18f   :  { %v1253_v9 = vsel %vm1252_vm2, %v1247_v16, -1e+30 }
 0x190   :  { %v1255_v17 = vsel %vm1254_vm3, %v1253_v9, -inf }
 0x191   :  { %1256 = vmax.xlane.f32.xlu0 %v1255_v17 }
 0x194   :  { %v1248_v18 = vpop.f32.mrf.mxu3 }
 0x204   :  { %v1257_v19 = vpop.xlane.xlu0 %1256 }
 0x205   :  { %v1258_v20 = vsub.f32 %v1253_v9, %v1257_v19 }
 0x207   :  { %v1259_v21 = vmul.f32 1.442695, %v1258_v20 }
 0x209   :  { %2009 = vpow2.f32 %v1259_v21 }
 0x20f   :  { %v2010_v22 = vpop.eup %2009 }
 0x210   :  { %v1261_v23 = vsel %vm1254_vm3, %v2010_v22, 0.0 }
 0x211   :  { %1262 = vadd.xlane.f32.xlu0 %v1261_v23 }
 0x284   :  { %v1263_v24 = vpop.xlane.xlu0 %1262 }
 0x285   :  { %2011 = vlog2.f32 %v1263_v24 }
 0x28b   :  { %v2012_v25 = vpop.eup %2011 }
 0x28c   :  { %v1265_v26 = vmul.f32 0.6931472, %v2012_v25 }
 0x28e   :  { %v1266_v27 = vsub.f32 %v1258_v20, %v1265_v26 }
 0x290   :  { %1267 = vst [vmem:[#allocation2] sm:$0x3] %v1266_v27 }
 0x291   :  { %1278 = dma.vmem_to_hbm [thread:$0]  %s1274_s1, 32, %s1276_s30, [#allocation3]  }
 0x292   :  { %2037 = dma.done.wait [#allocation3], 32  }
 0x293   :  { %2038 = vsyncadd [#allocation3], 4294967264 }
 0x294   :  { %1283 = vsyncpa [#allocation3], 1 }

</bundles_post_ra>
